<compile_context>
chip_gen: v6e
topology: v6e:2x2x1
jax: 0.10.0
libtpu: 0.0.40
codegen_flags: <defaults>
</compile_context>

<pallas_src>
import functools

import jax
import jax.numpy as jnp
from jax import lax
from jax.experimental import pallas as pl
from jax.experimental.pallas import tpu as pltpu


def _round_up(x, m):
    return ((x + m - 1) // m) * m


def _default_vmem_limit():
    """Generation-aware scoped-VMEM limit (v5e/v6e: ~109 MiB, v7x: ~54 MiB)."""
    try:
        info = pltpu.get_tpu_info()
        cap = int(getattr(info, "vmem_capacity_bytes", 0) or 0)
        if cap > 0:
            return max(32 << 20, min(int(cap * 0.85), 112 << 20))
    except Exception:
        pass
    return 32 << 20


_VMEM_LIMIT = _default_vmem_limit()


# ----------------------------------------------------------------------------
# Fused GeoCyclic conv kernel
# ----------------------------------------------------------------------------
def _geo_conv_kernel(*refs, K, Cin, Wp, Lpad, eps, activation, has_ln,
                     has_res, dt, inv_norm):
    """conv3x3 (+bias) [+LayerNorm+SiLU] [+SiLU] [+ residual x + dt*y].

    refs = (x, w, b, [gamma, beta, mask], [res], out, im2col_scratch)
      x    : (Cin, (H+2)*Wp + slack)  bf16 flattened geo-padded input
      w    : (Cout, K*K*Cin)          bf16 stacked-tap weight matrix
      b    : (Cout, 1)                fp32
      gamma/beta : (Cout, Lpad)       fp32 LN affine, zero at junk cols/chans
      mask : (Cout, Lpad)             1.0 at valid (chan, col) positions
      res  : (Cout, Lpad)             fp32 residual term, zero at junk
      out  : (Cout, Lpad)             fp32, lane-dense, maps back to NCHW
      col  : (K*K*Cin, Lpad)          bf16 VMEM scratch (im2col slab)
    """
    it = iter(refs)
    x_ref = next(it)
    w_ref = next(it)
    b_ref = next(it)
    if has_ln:
        g_ref = next(it)
        bt_ref = next(it)
        m_ref = next(it)
    if has_res:
        r_ref = next(it)
    o_ref = next(it)
    col_ref = next(it)

    # Stacked-tap im2col fill: each filter tap (kh,kw) is a contiguous window
    # of the flattened slab at static offset kh*Wp+kw.
    for kh in range(K):
        for kw in range(K):
            t = kh * K + kw
            off = kh * Wp + kw
            col_ref[t * Cin:(t + 1) * Cin, :] = x_ref[:, off:off + Lpad]

    # One bf16 MXU matmul, fp32 accumulation.
    acc = jnp.dot(w_ref[...], col_ref[...],
                  preferred_element_type=jnp.float32)        # (Cout, Lpad)
    acc = acc + b_ref[...]                                   # (Cout,1) bcast

    if has_ln:
        m = m_ref[...]                                       # (Cout, Lpad)
        mean = jnp.sum(acc * m) * inv_norm
        cen = acc - mean
        var = jnp.sum(cen * cen * m) * inv_norm              # biased, as torch LN
        acc = cen * lax.rsqrt(var + eps) * g_ref[...] + bt_ref[...]

    if activation == "silu":
        acc = acc * jax.nn.sigmoid(acc)

    if has_res:
        acc = r_ref[...] + dt * acc                          # ForcingsIntegrator

    o_ref[...] = acc.astype(o_ref.dtype)


def _flat_pad_chw(a, Cout, Cout_p, H, W, Wp, L, Lpad):
    """(Cout,H,W) -> zero-padded fp32 (Cout_p, Lpad) in flattened layout."""
    a = jnp.pad(a, ((0, Cout_p - Cout), (0, 0), (0, Wp - W)))
    a = a.reshape(Cout_p, H * Wp)
    a = jnp.pad(a, ((0, 0), (0, Lpad - L)))
    return a.astype(jnp.float32)


def geo_conv3x3(x, w, bias, *, ln_params=None, activation=None,
                residual=None, dt=None, eps=1e-5):
    """GeoCyclic-padded 3x3 conv with fused (optional) LN+SiLU / SiLU / residual."""
    B, Cin, H, W = x.shape
    Cout = w.shape[0]
    K = 3
    Hp, Wp = H + K - 1, W + K - 1
    L = H * Wp                              # valid flattened length (cols >= W junk)
    Lpad = _round_up(L, 128)                # lane-dense accumulator / output
    Cin_p = _round_up(Cin, 8)
    Cout_p = _round_up(Cout, 8)
    max_off = (K - 1) * Wp + (K - 1)
    Next = max_off + Lpad                   # slab length so the last tap is in-bounds

    # TODO(synk): the GeoCyclic halo is still materialized once per conv in
    # HBM by XLA glue; folding the pole flip/roll into in-kernel DMA is future work.
    xp = geo_pad(x, K // 2)                                        # (B,Cin,Hp,Wp)
    if Cin_p != Cin:
        xp = jnp.pad(xp, ((0, 0), (0, Cin_p - Cin), (0, 0), (0, 0)))
    xp = xp.reshape(B, Cin_p, Hp * Wp)
    xp = jnp.pad(xp, ((0, 0), (0, 0), (0, Next - Hp * Wp)))
    xp = xp.astype(jnp.bfloat16)                                   # MXU operand only

    # Stacked-tap weight: (Cout,Cin,K,K) -> (Cout_p, K*K*Cin_p), bf16.
    wk = w
    if Cout_p != Cout or Cin_p != Cin:
        wk = jnp.pad(wk, ((0, Cout_p - Cout), (0, Cin_p - Cin), (0, 0), (0, 0)))
    wk = jnp.transpose(wk, (0, 2, 3, 1)).reshape(Cout_p, K * K * Cin_p)
    wk = wk.astype(jnp.bfloat16)

    b2 = bias
    if Cout_p != Cout:
        b2 = jnp.pad(b2, ((0, Cout_p - Cout),))
    b2 = b2.reshape(Cout_p, 1).astype(jnp.float32)

    inputs = [xp, wk, b2]
    in_specs = [
        pl.BlockSpec((None, Cin_p, Next), lambda bi: (bi, 0, 0)),
        pl.BlockSpec((Cout_p, K * K * Cin_p), lambda bi: (0, 0)),   # weight-stationary
        pl.BlockSpec((Cout_p, 1), lambda bi: (0, 0)),
    ]

    has_ln = ln_params is not None
    if has_ln:
        gamma, beta = ln_params
        gp = _flat_pad_chw(gamma, Cout, Cout_p, H, W, Wp, L, Lpad)
        bp = _flat_pad_chw(beta, Cout, Cout_p, H, W, Wp, L, Lpad)
        mask = _flat_pad_chw(jnp.ones((Cout, H, W), jnp.float32),
                             Cout, Cout_p, H, W, Wp, L, Lpad)
        inputs += [gp, bp, mask]
        in_specs += [
            pl.BlockSpec((Cout_p, Lpad), lambda bi: (0, 0)),
            pl.BlockSpec((Cout_p, Lpad), lambda bi: (0, 0)),
            pl.BlockSpec((Cout_p, Lpad), lambda bi: (0, 0)),
        ]

    has_res = residual is not None
    if has_res:
        rp = jnp.pad(residual,
                     ((0, 0), (0, Cout_p - Cout), (0, 0), (0, Wp - W)))
        rp = rp.reshape(B, Cout_p, L)
        rp = jnp.pad(rp, ((0, 0), (0, 0), (0, Lpad - L))).astype(jnp.float32)
        inputs.append(rp)
        in_specs.append(pl.BlockSpec((None, Cout_p, Lpad), lambda bi: (bi, 0, 0)))

    kernel = functools.partial(
        _geo_conv_kernel, K=K, Cin=Cin_p, Wp=Wp, Lpad=Lpad, eps=float(eps),
        activation=activation, has_ln=has_ln, has_res=has_res,
        dt=0.0 if dt is None else float(dt),
        inv_norm=1.0 / float(Cout * H * W))

    grid_spec = pltpu.PrefetchScalarGridSpec(
        num_scalar_prefetch=0,
        grid=(B,),
        in_specs=in_specs,
        out_specs=pl.BlockSpec((None, Cout_p, Lpad), lambda bi: (bi, 0, 0)),
        scratch_shapes=[pltpu.VMEM((K * K * Cin_p, Lpad), jnp.bfloat16)],
    )

    out = pl.pallas_call(
        kernel,
        out_shape=jax.ShapeDtypeStruct((B, Cout_p, Lpad), jnp.float32),
        grid_spec=grid_spec,
        compiler_params=pltpu.CompilerParams(
            dimension_semantics=("parallel",),
            vmem_limit_bytes=_VMEM_LIMIT),
    )(*inputs)

    # Drop padded channels / junk columns; lands directly in NCHW.
    return out[:, :Cout, :L].reshape(B, Cout, H, Wp)[:, :, :, :W]


def clp_double(x, p, *, residual=None, dt=None):
    """CLP block: pad->conv->LN->SiLU->pad->conv->SiLU (two fused kernels)."""
    y = geo_conv3x3(x, p["w1"], p["b1"], ln_params=(p["ln_g"], p["ln_b"]),
                    activation="silu")
    y = geo_conv3x3(y, p["w2"], p["b2"], activation="silu",
                    residual=residual, dt=dt)
    return y


# ----------------------------------------------------------------------------
# JAX glue: padding, grid_sample, trig transform
# ----------------------------------------------------------------------------
# TODO(synk): GeoCyclicPadding source not provided in the reference; using the
# standard spherical padding (circular in longitude, pole rows mirrored in
# latitude and rolled by 180 degrees in longitude).
def geo_pad(x, pad):
    B, C, H, W = x.shape
    top = jnp.roll(jnp.flip(x[:, :, :pad, :], axis=2), shift=W // 2, axis=3)
    bot = jnp.roll(jnp.flip(x[:, :, H - pad:, :], axis=2), shift=W // 2, axis=3)
    x = jnp.concatenate([top, x, bot], axis=2)
    left = x[:, :, :, W - pad:]
    right = x[:, :, :, :pad]
    return jnp.concatenate([left, x, right], axis=3)


# TODO(synk): bicubic grid_sample is a data-dependent 4x4 gather with no clean
# Pallas TPU equivalent; implemented in plain JAX (PyTorch semantics:
# align_corners=True, padding_mode='border', A=-0.75 cubic kernel).
def grid_sample_bicubic_border(inp, grid):
    N, _, Hin, Win = inp.shape
    gx, gy = grid[..., 0], grid[..., 1]
    ix = (gx + 1.0) * 0.5 * (Win - 1)
    iy = (gy + 1.0) * 0.5 * (Hin - 1)
    ix0f = jnp.floor(ix)
    iy0f = jnp.floor(iy)
    tx = ix - ix0f
    ty = iy - iy0f
    ix0 = ix0f.astype(jnp.int32)
    iy0 = iy0f.astype(jnp.int32)

    A = -0.75

    def cc1(x):
        return ((A + 2.0) * x - (A + 3.0)) * x * x + 1.0

    def cc2(x):
        return ((A * x - 5.0 * A) * x + 8.0 * A) * x - 4.0 * A

    def coeffs(t):
        return [cc2(t + 1.0), cc1(t), cc1(1.0 - t), cc2(2.0 - t)]

    wx = coeffs(tx)
    wy = coeffs(ty)

    img = inp[:, 0]                                     # (N, Hin, Win)
    bidx = jnp.arange(N)[:, None, None]
    out = jnp.zeros_like(ix)
    for j in range(4):
        yy = jnp.clip(iy0 - 1 + j, 0, Hin - 1)
        row = jnp.zeros_like(ix)
        for i in range(4):
            xx = jnp.clip(ix0 - 1 + i, 0, Win - 1)
            row = row + wx[i] * img[bidx, yy, xx]
        out = out + wy[j] * row
    return out[:, None]                                 # (N, 1, Hout, Wout)


def advection(z, lat_grid, lon_grid, dt, p_vel, hidden):
    """NeuralSemiLagrangian (non-variational) advection step."""
    B, _, H, W = z.shape
    vel = clp_double(z, p_vel)                          # (B, 2*hidden, H, W)
    u = vel[:, :hidden]
    v = vel[:, hidden:2 * hidden]
    lon_prime = -u * dt
    lat_prime = -v * dt
    lat_p = jnp.broadcast_to(lat_grid[:, None], (B, hidden, H, W))
    lon_p = jnp.broadcast_to(lon_grid[:, None], (B, hidden, H, W))

    # TODO(synk): arcsin / atan2 have no reliable Mosaic lowering; the
    # departure-point trigonometry stays in plain JAX.
    sin_lat_prime = jnp.sin(lat_prime)
    cos_lat_prime = jnp.cos(lat_prime)
    sin_lon_prime = jnp.sin(lon_prime)
    cos_lon_prime = jnp.cos(lon_prime)
    sin_lat_p = jnp.sin(lat_p)
    cos_lat_p = jnp.cos(lat_p)
    sin_lat = sin_lat_prime * cos_lat_p + cos_lat_prime * cos_lon_prime * sin_lat_p
    lat = jnp.arcsin(jnp.clip(sin_lat, -1.0 + 1e-7, 1.0 - 1e-7))
    num = cos_lat_prime * sin_lon_prime
    den = cos_lat_prime * cos_lon_prime * cos_lat_p - sin_lat_prime * sin_lat_p
    lon = lon_p + jnp.arctan2(num, den)
    lon = jnp.remainder(lon + 2.0 * jnp.pi, 2.0 * jnp.pi)

    grid_x = jnp.remainder(lon / jnp.pi, 2.0) - 1.0
    grid_y = 2.0 * lat / jnp.pi
    grid_y = jnp.where(grid_y < -1.0, -(2.0 + grid_y), grid_y)
    grid_y = jnp.where(grid_y > 1.0, 2.0 - grid_y, grid_y)

    grid = jnp.stack(
        [grid_x.reshape(B * hidden, H, W), grid_y.reshape(B * hidden, H, W)],
        axis=-1,
    )
    zp = geo_pad(z, 1).reshape(B * hidden, 1, H + 2, W + 2)
    interp = grid_sample_bicubic_border(zp, grid)       # (B*hidden, 1, H, W)
    return interp.reshape(B, hidden, H, W)


def paradis_forward(x, params, *, hidden, dt):
    """Full Paradis forward (variational=False)."""
    lat_grid = x[:, -2]                                 # last two static channels
    lon_grid = x[:, -1]
    z = clp_double(x, params["input_proj"])                       # input_proj
    z = advection(z, lat_grid, lon_grid, dt, params["velocity"], hidden)
    # ForcingsIntegrator: z + dt * CLP(z); the residual is fused into the
    # epilogue of the second conv kernel.
    z = clp_double(z, params["forcings"], residual=z, dt=dt)
    out = geo_conv3x3(z, params["out_w"], params["out_b"], activation=None)
    return out


# ----------------------------------------------------------------------------
# Deterministic parameter init
# ----------------------------------------------------------------------------
def init_clp(key, cin, cout, H, W):
    k1, k2, k3, k4 = jax.random.split(key, 4)
    s = 1.0 / float(jnp.sqrt(cin * 9.0))
    return dict(
        w1=jax.random.normal(k1, (cin, cin, 3, 3), jnp.float32) * s,
        b1=jax.random.normal(k2, (cin,), jnp.float32) * 0.01,
        ln_g=jnp.ones((cin, H, W), jnp.float32),
        ln_b=jnp.zeros((cin, H, W), jnp.float32),
        w2=jax.random.normal(k3, (cout, cin, 3, 3), jnp.float32) * s,
        b2=jax.random.normal(k4, (cout,), jnp.float32) * 0.01,
    )


if __name__ == "__main__":
    # Small synthetic configuration (variational / ensemble disabled).
    B = 2
    num_levels = 2
    n_atmospheric, n_surface = 1, 2           # dynamic = 1*2 + 2 = 4
    n_constants, n_forcings = 2, 2            # static = 4 (last two = lat, lon grids)
    dynamic = n_atmospheric * num_levels + n_surface
    static = n_constants + n_forcings
    hidden_multiplier = 1
    hidden = hidden_multiplier * dynamic + static       # 8
    output_dim = 4
    H, W = 8, 16                                        # mesh_size = (lat, lon)
    dt = 3600.0 / 729212.0                              # base_dt / SYNOPTIC_TIME_SCALE

    key = jax.random.PRNGKey(0)
    kx, kp1, kp2, kp3, kw = jax.random.split(key, 5)

    x = jax.random.normal(kx, (B, dynamic + static, H, W), jnp.float32)
    lat1d = jnp.linspace(-jnp.pi / 2 + 0.1, jnp.pi / 2 - 0.1, H)
    lon1d = jnp.linspace(0.0, 2.0 * jnp.pi, W, endpoint=False)
    x = x.at[:, -2].set(jnp.broadcast_to(lat1d[:, None], (H, W)))
    x = x.at[:, -1].set(jnp.broadcast_to(lon1d[None, :], (H, W)))

    params = dict(
        input_proj=init_clp(kp1, dynamic + static, hidden, H, W),
        velocity=init_clp(kp2, hidden, 2 * hidden, H, W),
        forcings=init_clp(kp3, hidden, hidden, H, W),
        out_w=jax.random.normal(kw, (output_dim, hidden, 3, 3), jnp.float32)
        * (1.0 / float(jnp.sqrt(hidden * 9.0))),
        out_b=jnp.zeros((output_dim,), jnp.float32),
    )

    fwd = jax.jit(functools.partial(paradis_forward, hidden=hidden, dt=dt))
    out = fwd(x, params)
    jax.block_until_ready(out)
    assert out.shape == (B, output_dim, H, W), out.shape
    assert bool(jnp.all(jnp.isfinite(out)))
    print("KERNEL_OK")
</pallas_src>

<mosaic_0001>
module attributes {stable_mosaic.version = 11 : i64} {
  func.func @_geo_conv_kernel(%arg0: i32, %arg1: memref<1x8x294xbf16, #tpu.memory_space<vmem>>, %arg2: memref<8x72xbf16, #tpu.memory_space<vmem>>, %arg3: memref<8x1xf32, #tpu.memory_space<vmem>>, %arg4: memref<1x8x256xf32, #tpu.memory_space<vmem>>, %arg5: memref<72x256xbf16, #tpu.memory_space<vmem>>) attributes {dimension_semantics = [#tpu.dimension_semantics<parallel>], iteration_bounds = array<i64: 2>, scalar_prefetch = 0 : i64, scratch_operands = 1 : i64, tpu.core_type = #tpu.core_type<tc>, window_params = [{transform_indices = @transform_0, window_bounds = array<i64: 1, 8, 294>}, {pipeline_mode = #tpu.pipeline_mode<synchronous>, transform_indices = @transform_1, window_bounds = array<i64: 8, 72>}, {pipeline_mode = #tpu.pipeline_mode<synchronous>, transform_indices = @transform_2, window_bounds = array<i64: 8, 1>}, {transform_indices = @transform_3, window_bounds = array<i64: 1, 8, 256>}]} {
    %c0 = arith.constant 0 : index
    %c0_0 = arith.constant 0 : index
    %c0_1 = arith.constant 0 : index
    %0 = vector.load %arg1[%c0, %c0_0, %c0_1] : memref<1x8x294xbf16, #tpu.memory_space<vmem>>, vector<1x8x256xbf16>
    %1 = vector.shape_cast %0 : vector<1x8x256xbf16> to vector<8x256xbf16>
    %c0_2 = arith.constant 0 : index
    %c0_3 = arith.constant 0 : index
    %2 = vector.load %arg5[%c0_2, %c0_3] : memref<72x256xbf16, #tpu.memory_space<vmem>>, vector<8x256xbf16>
    tpu.vector_store %arg5[%c0_2, %c0_3], %1 {strides = array<i32>} : memref<72x256xbf16, #tpu.memory_space<vmem>>, vector<8x256xbf16>,
    %c0_4 = arith.constant 0 : index
    %c0_5 = arith.constant 0 : index
    %c1 = arith.constant 1 : index
    %3 = vector.load %arg1[%c0_4, %c0_5, %c1] : memref<1x8x294xbf16, #tpu.memory_space<vmem>>, vector<1x8x256xbf16>
    %4 = vector.shape_cast %3 : vector<1x8x256xbf16> to vector<8x256xbf16>
    %c8 = arith.constant 8 : index
    %c0_6 = arith.constant 0 : index
    %5 = vector.load %arg5[%c8, %c0_6] : memref<72x256xbf16, #tpu.memory_space<vmem>>, vector<8x256xbf16>
    tpu.vector_store %arg5[%c8, %c0_6], %4 {strides = array<i32>} : memref<72x256xbf16, #tpu.memory_space<vmem>>, vector<8x256xbf16>,
    %c0_7 = arith.constant 0 : index
    %c0_8 = arith.constant 0 : index
    %c2 = arith.constant 2 : index
    %6 = vector.load %arg1[%c0_7, %c0_8, %c2] : memref<1x8x294xbf16, #tpu.memory_space<vmem>>, vector<1x8x256xbf16>
    %7 = vector.shape_cast %6 : vector<1x8x256xbf16> to vector<8x256xbf16>
    %c16 = arith.constant 16 : index
    %c0_9 = arith.constant 0 : index
    %8 = vector.load %arg5[%c16, %c0_9] : memref<72x256xbf16, #tpu.memory_space<vmem>>, vector<8x256xbf16>
    tpu.vector_store %arg5[%c16, %c0_9], %7 {strides = array<i32>} : memref<72x256xbf16, #tpu.memory_space<vmem>>, vector<8x256xbf16>,
    %c0_10 = arith.constant 0 : index
    %c0_11 = arith.constant 0 : index
    %c18 = arith.constant 18 : index
    %9 = vector.load %arg1[%c0_10, %c0_11, %c18] : memref<1x8x294xbf16, #tpu.memory_space<vmem>>, vector<1x8x256xbf16>
    %10 = vector.shape_cast %9 : vector<1x8x256xbf16> to vector<8x256xbf16>
    %c24 = arith.constant 24 : index
    %c0_12 = arith.constant 0 : index
    %11 = vector.load %arg5[%c24, %c0_12] : memref<72x256xbf16, #tpu.memory_space<vmem>>, vector<8x256xbf16>
    tpu.vector_store %arg5[%c24, %c0_12], %10 {strides = array<i32>} : memref<72x256xbf16, #tpu.memory_space<vmem>>, vector<8x256xbf16>,
    %c0_13 = arith.constant 0 : index
    %c0_14 = arith.constant 0 : index
    %c19 = arith.constant 19 : index
    %12 = vector.load %arg1[%c0_13, %c0_14, %c19] : memref<1x8x294xbf16, #tpu.memory_space<vmem>>, vector<1x8x256xbf16>
    %13 = vector.shape_cast %12 : vector<1x8x256xbf16> to vector<8x256xbf16>
    %c32 = arith.constant 32 : index
    %c0_15 = arith.constant 0 : index
    %14 = vector.load %arg5[%c32, %c0_15] : memref<72x256xbf16, #tpu.memory_space<vmem>>, vector<8x256xbf16>
    tpu.vector_store %arg5[%c32, %c0_15], %13 {strides = array<i32>} : memref<72x256xbf16, #tpu.memory_space<vmem>>, vector<8x256xbf16>,
    %c0_16 = arith.constant 0 : index
    %c0_17 = arith.constant 0 : index
    %c20 = arith.constant 20 : index
    %15 = vector.load %arg1[%c0_16, %c0_17, %c20] : memref<1x8x294xbf16, #tpu.memory_space<vmem>>, vector<1x8x256xbf16>
    %16 = vector.shape_cast %15 : vector<1x8x256xbf16> to vector<8x256xbf16>
    %c40 = arith.constant 40 : index
    %c0_18 = arith.constant 0 : index
    %17 = vector.load %arg5[%c40, %c0_18] : memref<72x256xbf16, #tpu.memory_space<vmem>>, vector<8x256xbf16>
    tpu.vector_store %arg5[%c40, %c0_18], %16 {strides = array<i32>} : memref<72x256xbf16, #tpu.memory_space<vmem>>, vector<8x256xbf16>,
    %c0_19 = arith.constant 0 : index
    %c0_20 = arith.constant 0 : index
    %c36 = arith.constant 36 : index
    %18 = vector.load %arg1[%c0_19, %c0_20, %c36] : memref<1x8x294xbf16, #tpu.memory_space<vmem>>, vector<1x8x256xbf16>
    %19 = vector.shape_cast %18 : vector<1x8x256xbf16> to vector<8x256xbf16>
    %c48 = arith.constant 48 : index
    %c0_21 = arith.constant 0 : index
    %20 = vector.load %arg5[%c48, %c0_21] : memref<72x256xbf16, #tpu.memory_space<vmem>>, vector<8x256xbf16>
    tpu.vector_store %arg5[%c48, %c0_21], %19 {strides = array<i32>} : memref<72x256xbf16, #tpu.memory_space<vmem>>, vector<8x256xbf16>,
    %c0_22 = arith.constant 0 : index
    %c0_23 = arith.constant 0 : index
    %c37 = arith.constant 37 : index
    %21 = vector.load %arg1[%c0_22, %c0_23, %c37] : memref<1x8x294xbf16, #tpu.memory_space<vmem>>, vector<1x8x256xbf16>
    %22 = vector.shape_cast %21 : vector<1x8x256xbf16> to vector<8x256xbf16>
    %c56 = arith.constant 56 : index
    %c0_24 = arith.constant 0 : index
    %23 = vector.load %arg5[%c56, %c0_24] : memref<72x256xbf16, #tpu.memory_space<vmem>>, vector<8x256xbf16>
    tpu.vector_store %arg5[%c56, %c0_24], %22 {strides = array<i32>} : memref<72x256xbf16, #tpu.memory_space<vmem>>, vector<8x256xbf16>,
    %c0_25 = arith.constant 0 : index
    %c0_26 = arith.constant 0 : index
    %c38 = arith.constant 38 : index
    %24 = vector.load %arg1[%c0_25, %c0_26, %c38] : memref<1x8x294xbf16, #tpu.memory_space<vmem>>, vector<1x8x256xbf16>
    %25 = vector.shape_cast %24 : vector<1x8x256xbf16> to vector<8x256xbf16>
    %c64 = arith.constant 64 : index
    %c0_27 = arith.constant 0 : index
    %26 = vector.load %arg5[%c64, %c0_27] : memref<72x256xbf16, #tpu.memory_space<vmem>>, vector<8x256xbf16>
    tpu.vector_store %arg5[%c64, %c0_27], %25 {strides = array<i32>} : memref<72x256xbf16, #tpu.memory_space<vmem>>, vector<8x256xbf16>,
    %c0_28 = arith.constant 0 : index
    %c0_29 = arith.constant 0 : index
    %27 = vector.load %arg2[%c0_28, %c0_29] : memref<8x72xbf16, #tpu.memory_space<vmem>>, vector<8x72xbf16>
    %c0_30 = arith.constant 0 : index
    %c0_31 = arith.constant 0 : index
    %28 = vector.load %arg5[%c0_30, %c0_31] : memref<72x256xbf16, #tpu.memory_space<vmem>>, vector<72x256xbf16>
    %cst = arith.constant dense<0.000000e+00> : vector<8x256xf32>
    %29 = tpu.matmul %27, %28, %cst {dimension_numbers = #tpu.dot_dimension_numbers<[1], [0], [0], [1], [0, 0, 1, 1], [], []>} : vector<8x72xbf16>, vector<72x256xbf16>, vector<8x256xf32> -> vector<8x256xf32>
    %c0_32 = arith.constant 0 : index
    %c0_33 = arith.constant 0 : index
    %30 = vector.load %arg3[%c0_32, %c0_33] : memref<8x1xf32, #tpu.memory_space<vmem>>, vector<8x1xf32>
    %31 = vector.broadcast %30 : vector<8x1xf32> to vector<8x256xf32>
    %32 = arith.addf %29, %31 : vector<8x256xf32>
    %33 = arith.negf %32 : vector<8x256xf32>
    %34 = math.exp %33 : vector<8x256xf32>
    %cst_34 = arith.constant 1.000000e+00 : f32
    %35 = vector.broadcast %cst_34 : f32 to vector<8x256xf32>
    %36 = arith.addf %35, %34 : vector<8x256xf32>
    %37 = arith.divf %35, %36 : vector<8x256xf32>
    %38 = arith.mulf %32, %37 : vector<8x256xf32>
    %c0_35 = arith.constant 0 : index
    %c0_36 = arith.constant 0 : index
    %c0_37 = arith.constant 0 : index
    %39 = vector.load %arg4[%c0_35, %c0_36, %c0_37] : memref<1x8x256xf32, #tpu.memory_space<vmem>>, vector<1x8x256xf32>
    %40 = vector.shape_cast %39 : vector<1x8x256xf32> to vector<8x256xf32>
    %41 = vector.shape_cast %38 : vector<8x256xf32> to vector<1x8x256xf32>
    tpu.vector_store %arg4[%c0_35, %c0_36, %c0_37], %41 {strides = array<i32>} : memref<1x8x256xf32, #tpu.memory_space<vmem>>, vector<1x8x256xf32>,
    return
  }
  func.func @transform_0(%arg0: i32) -> (i32, i32, i32) {
    %c0_i32 = arith.constant 0 : i32
    %c0_i32_0 = arith.constant 0 : i32
    %c0_i32_1 = arith.constant 0 : i32
    return %arg0, %c0_i32, %c0_i32_0 : i32, i32, i32
  }
  func.func @transform_1(%arg0: i32) -> (i32, i32) {
    %c0_i32 = arith.constant 0 : i32
    %c0_i32_0 = arith.constant 0 : i32
    %c0_i32_1 = arith.constant 0 : i32
    return %c0_i32, %c0_i32_0 : i32, i32
  }
  func.func @transform_2(%arg0: i32) -> (i32, i32) {
    %c0_i32 = arith.constant 0 : i32
    %c0_i32_0 = arith.constant 0 : i32
    %c0_i32_1 = arith.constant 0 : i32
    return %c0_i32, %c0_i32_0 : i32, i32
  }
  func.func @transform_3(%arg0: i32) -> (i32, i32, i32) {
    %c0_i32 = arith.constant 0 : i32
    %c0_i32_0 = arith.constant 0 : i32
    %c0_i32_1 = arith.constant 0 : i32
    return %arg0, %c0_i32, %c0_i32_0 : i32, i32, i32
  }
}

module attributes {stable_mosaic.version = 11 : i64} {
  func.func @_geo_conv_kernel(%arg0: i32, %arg1: memref<1x8x294xbf16, #tpu.memory_space<vmem>>, %arg2: memref<8x72xbf16, #tpu.memory_space<vmem>>, %arg3: memref<8x1xf32, #tpu.memory_space<vmem>>, %arg4: memref<8x256xf32, #tpu.memory_space<vmem>>, %arg5: memref<8x256xf32, #tpu.memory_space<vmem>>, %arg6: memref<8x256xf32, #tpu.memory_space<vmem>>, %arg7: memref<1x8x256xf32, #tpu.memory_space<vmem>>, %arg8: memref<72x256xbf16, #tpu.memory_space<vmem>>) attributes {dimension_semantics = [#tpu.dimension_semantics<parallel>], iteration_bounds = array<i64: 2>, scalar_prefetch = 0 : i64, scratch_operands = 1 : i64, tpu.core_type = #tpu.core_type<tc>, window_params = [{transform_indices = @transform_0, window_bounds = array<i64: 1, 8, 294>}, {pipeline_mode = #tpu.pipeline_mode<synchronous>, transform_indices = @transform_1, window_bounds = array<i64: 8, 72>}, {pipeline_mode = #tpu.pipeline_mode<synchronous>, transform_indices = @transform_2, window_bounds = array<i64: 8, 1>}, {pipeline_mode = #tpu.pipeline_mode<synchronous>, transform_indices = @transform_3, window_bounds = array<i64: 8, 256>}, {pipeline_mode = #tpu.pipeline_mode<synchronous>, transform_indices = @transform_4, window_bounds = array<i64: 8, 256>}, {pipeline_mode = #tpu.pipeline_mode<synchronous>, transform_indices = @transform_5, window_bounds = array<i64: 8, 256>}, {transform_indices = @transform_6, window_bounds = array<i64: 1, 8, 256>}]} {
    %c0 = arith.constant 0 : index
    %c0_0 = arith.constant 0 : index
    %c0_1 = arith.constant 0 : index
    %0 = vector.load %arg1[%c0, %c0_0, %c0_1] : memref<1x8x294xbf16, #tpu.memory_space<vmem>>, vector<1x8x256xbf16>
    %1 = vector.shape_cast %0 : vector<1x8x256xbf16> to vector<8x256xbf16>
    %c0_2 = arith.constant 0 : index
    %c0_3 = arith.constant 0 : index
    %2 = vector.load %arg8[%c0_2, %c0_3] : memref<72x256xbf16, #tpu.memory_space<vmem>>, vector<8x256xbf16>
    tpu.vector_store %arg8[%c0_2, %c0_3], %1 {strides = array<i32>} : memref<72x256xbf16, #tpu.memory_space<vmem>>, vector<8x256xbf16>,
    %c0_4 = arith.constant 0 : index
    %c0_5 = arith.constant 0 : index
    %c1 = arith.constant 1 : index
    %3 = vector.load %arg1[%c0_4, %c0_5, %c1] : memref<1x8x294xbf16, #tpu.memory_space<vmem>>, vector<1x8x256xbf16>
    %4 = vector.shape_cast %3 : vector<1x8x256xbf16> to vector<8x256xbf16>
    %c8 = arith.constant 8 : index
    %c0_6 = arith.constant 0 : index
    %5 = vector.load %arg8[%c8, %c0_6] : memref<72x256xbf16, #tpu.memory_space<vmem>>, vector<8x256xbf16>
    tpu.vector_store %arg8[%c8, %c0_6], %4 {strides = array<i32>} : memref<72x256xbf16, #tpu.memory_space<vmem>>, vector<8x256xbf16>,
    %c0_7 = arith.constant 0 : index
    %c0_8 = arith.constant 0 : index
    %c2 = arith.constant 2 : index
    %6 = vector.load %arg1[%c0_7, %c0_8, %c2] : memref<1x8x294xbf16, #tpu.memory_space<vmem>>, vector<1x8x256xbf16>
    %7 = vector.shape_cast %6 : vector<1x8x256xbf16> to vector<8x256xbf16>
    %c16 = arith.constant 16 : index
    %c0_9 = arith.constant 0 : index
    %8 = vector.load %arg8[%c16, %c0_9] : memref<72x256xbf16, #tpu.memory_space<vmem>>, vector<8x256xbf16>
    tpu.vector_store %arg8[%c16, %c0_9], %7 {strides = array<i32>} : memref<72x256xbf16, #tpu.memory_space<vmem>>, vector<8x256xbf16>,
    %c0_10 = arith.constant 0 : index
    %c0_11 = arith.constant 0 : index
    %c18 = arith.constant 18 : index
    %9 = vector.load %arg1[%c0_10, %c0_11, %c18] : memref<1x8x294xbf16, #tpu.memory_space<vmem>>, vector<1x8x256xbf16>
    %10 = vector.shape_cast %9 : vector<1x8x256xbf16> to vector<8x256xbf16>
    %c24 = arith.constant 24 : index
    %c0_12 = arith.constant 0 : index
    %11 = vector.load %arg8[%c24, %c0_12] : memref<72x256xbf16, #tpu.memory_space<vmem>>, vector<8x256xbf16>
    tpu.vector_store %arg8[%c24, %c0_12], %10 {strides = array<i32>} : memref<72x256xbf16, #tpu.memory_space<vmem>>, vector<8x256xbf16>,
    %c0_13 = arith.constant 0 : index
    %c0_14 = arith.constant 0 : index
    %c19 = arith.constant 19 : index
    %12 = vector.load %arg1[%c0_13, %c0_14, %c19] : memref<1x8x294xbf16, #tpu.memory_space<vmem>>, vector<1x8x256xbf16>
    %13 = vector.shape_cast %12 : vector<1x8x256xbf16> to vector<8x256xbf16>
    %c32 = arith.constant 32 : index
    %c0_15 = arith.constant 0 : index
    %14 = vector.load %arg8[%c32, %c0_15] : memref<72x256xbf16, #tpu.memory_space<vmem>>, vector<8x256xbf16>
    tpu.vector_store %arg8[%c32, %c0_15], %13 {strides = array<i32>} : memref<72x256xbf16, #tpu.memory_space<vmem>>, vector<8x256xbf16>,
    %c0_16 = arith.constant 0 : index
    %c0_17 = arith.constant 0 : index
    %c20 = arith.constant 20 : index
    %15 = vector.load %arg1[%c0_16, %c0_17, %c20] : memref<1x8x294xbf16, #tpu.memory_space<vmem>>, vector<1x8x256xbf16>
    %16 = vector.shape_cast %15 : vector<1x8x256xbf16> to vector<8x256xbf16>
    %c40 = arith.constant 40 : index
    %c0_18 = arith.constant 0 : index
    %17 = vector.load %arg8[%c40, %c0_18] : memref<72x256xbf16, #tpu.memory_space<vmem>>, vector<8x256xbf16>
    tpu.vector_store %arg8[%c40, %c0_18], %16 {strides = array<i32>} : memref<72x256xbf16, #tpu.memory_space<vmem>>, vector<8x256xbf16>,
    %c0_19 = arith.constant 0 : index
    %c0_20 = arith.constant 0 : index
    %c36 = arith.constant 36 : index
    %18 = vector.load %arg1[%c0_19, %c0_20, %c36] : memref<1x8x294xbf16, #tpu.memory_space<vmem>>, vector<1x8x256xbf16>
    %19 = vector.shape_cast %18 : vector<1x8x256xbf16> to vector<8x256xbf16>
    %c48 = arith.constant 48 : index
    %c0_21 = arith.constant 0 : index
    %20 = vector.load %arg8[%c48, %c0_21] : memref<72x256xbf16, #tpu.memory_space<vmem>>, vector<8x256xbf16>
    tpu.vector_store %arg8[%c48, %c0_21], %19 {strides = array<i32>} : memref<72x256xbf16, #tpu.memory_space<vmem>>, vector<8x256xbf16>,
    %c0_22 = arith.constant 0 : index
    %c0_23 = arith.constant 0 : index
    %c37 = arith.constant 37 : index
    %21 = vector.load %arg1[%c0_22, %c0_23, %c37] : memref<1x8x294xbf16, #tpu.memory_space<vmem>>, vector<1x8x256xbf16>
    %22 = vector.shape_cast %21 : vector<1x8x256xbf16> to vector<8x256xbf16>
    %c56 = arith.constant 56 : index
    %c0_24 = arith.constant 0 : index
    %23 = vector.load %arg8[%c56, %c0_24] : memref<72x256xbf16, #tpu.memory_space<vmem>>, vector<8x256xbf16>
    tpu.vector_store %arg8[%c56, %c0_24], %22 {strides = array<i32>} : memref<72x256xbf16, #tpu.memory_space<vmem>>, vector<8x256xbf16>,
    %c0_25 = arith.constant 0 : index
    %c0_26 = arith.constant 0 : index
    %c38 = arith.constant 38 : index
    %24 = vector.load %arg1[%c0_25, %c0_26, %c38] : memref<1x8x294xbf16, #tpu.memory_space<vmem>>, vector<1x8x256xbf16>
    %25 = vector.shape_cast %24 : vector<1x8x256xbf16> to vector<8x256xbf16>
    %c64 = arith.constant 64 : index
    %c0_27 = arith.constant 0 : index
    %26 = vector.load %arg8[%c64, %c0_27] : memref<72x256xbf16, #tpu.memory_space<vmem>>, vector<8x256xbf16>
    tpu.vector_store %arg8[%c64, %c0_27], %25 {strides = array<i32>} : memref<72x256xbf16, #tpu.memory_space<vmem>>, vector<8x256xbf16>,
    %c0_28 = arith.constant 0 : index
    %c0_29 = arith.constant 0 : index
    %27 = vector.load %arg2[%c0_28, %c0_29] : memref<8x72xbf16, #tpu.memory_space<vmem>>, vector<8x72xbf16>
    %c0_30 = arith.constant 0 : index
    %c0_31 = arith.constant 0 : index
    %28 = vector.load %arg8[%c0_30, %c0_31] : memref<72x256xbf16, #tpu.memory_space<vmem>>, vector<72x256xbf16>
    %cst = arith.constant dense<0.000000e+00> : vector<8x256xf32>
    %29 = tpu.matmul %27, %28, %cst {dimension_numbers = #tpu.dot_dimension_numbers<[1], [0], [0], [1], [0, 0, 1, 1], [], []>} : vector<8x72xbf16>, vector<72x256xbf16>, vector<8x256xf32> -> vector<8x256xf32>
    %c0_32 = arith.constant 0 : index
    %c0_33 = arith.constant 0 : index
    %30 = vector.load %arg3[%c0_32, %c0_33] : memref<8x1xf32, #tpu.memory_space<vmem>>, vector<8x1xf32>
    %31 = vector.broadcast %30 : vector<8x1xf32> to vector<8x256xf32>
    %32 = arith.addf %29, %31 : vector<8x256xf32>
    %c0_34 = arith.constant 0 : index
    %c0_35 = arith.constant 0 : index
    %33 = vector.load %arg6[%c0_34, %c0_35] : memref<8x256xf32, #tpu.memory_space<vmem>>, vector<8x256xf32>
    %34 = arith.mulf %32, %33 : vector<8x256xf32>
    %35 = vector.shape_cast %34 : vector<8x256xf32> to vector<1x8x256xf32>
    %cst_36 = arith.constant dense<0.000000e+00> : vector<1xf32>
    %36 = vector.multi_reduction <add>, %35, %cst_36 [1, 2] : vector<1x8x256xf32> to vector<1xf32>
    %37 = vector.shape_cast %36 : vector<1xf32> to vector<1x1x1xf32>
    %38 = vector.extract %37[0, 0, 0] : f32 from vector<1x1x1xf32>
    %cst_37 = arith.constant 9.765625E-4 : f32
    %39 = arith.mulf %38, %cst_37 : f32
    %40 = vector.broadcast %39 : f32 to vector<8x256xf32>
    %41 = arith.subf %32, %40 : vector<8x256xf32>
    %42 = arith.mulf %41, %41 : vector<8x256xf32>
    %43 = arith.mulf %42, %33 : vector<8x256xf32>
    %44 = vector.shape_cast %43 : vector<8x256xf32> to vector<1x8x256xf32>
    %cst_38 = arith.constant dense<0.000000e+00> : vector<1xf32>
    %45 = vector.multi_reduction <add>, %44, %cst_38 [1, 2] : vector<1x8x256xf32> to vector<1xf32>
    %46 = vector.shape_cast %45 : vector<1xf32> to vector<1x1x1xf32>
    %47 = vector.extract %46[0, 0, 0] : f32 from vector<1x1x1xf32>
    %cst_39 = arith.constant 9.765625E-4 : f32
    %48 = arith.mulf %47, %cst_39 : f32
    %cst_40 = arith.constant 9.99999974E-6 : f32
    %49 = arith.addf %48, %cst_40 : f32
    %50 = math.rsqrt %49 : f32
    %51 = vector.broadcast %50 : f32 to vector<8x256xf32>
    %52 = arith.mulf %41, %51 : vector<8x256xf32>
    %c0_41 = arith.constant 0 : index
    %c0_42 = arith.constant 0 : index
    %53 = vector.load %arg4[%c0_41, %c0_42] : memref<8x256xf32, #tpu.memory_space<vmem>>, vector<8x256xf32>
    %54 = arith.mulf %52, %53 : vector<8x256xf32>
    %c0_43 = arith.constant 0 : index
    %c0_44 = arith.constant 0 : index
    %55 = vector.load %arg5[%c0_43, %c0_44] : memref<8x256xf32, #tpu.memory_space<vmem>>, vector<8x256xf32>
    %56 = arith.addf %54, %55 : vector<8x256xf32>
    %57 = arith.negf %56 : vector<8x256xf32>
    %58 = math.exp %57 : vector<8x256xf32>
    %cst_45 = arith.constant 1.000000e+00 : f32
    %59 = vector.broadcast %cst_45 : f32 to vector<8x256xf32>
    %60 = arith.addf %59, %58 : vector<8x256xf32>
    %61 = arith.divf %59, %60 : vector<8x256xf32>
    %62 = arith.mulf %56, %61 : vector<8x256xf32>
    %c0_46 = arith.constant 0 : index
    %c0_47 = arith.constant 0 : index
    %c0_48 = arith.constant 0 : index
    %63 = vector.load %arg7[%c0_46, %c0_47, %c0_48] : memref<1x8x256xf32, #tpu.memory_space<vmem>>, vector<1x8x256xf32>
    %64 = vector.shape_cast %63 : vector<1x8x256xf32> to vector<8x256xf32>
    %65 = vector.shape_cast %62 : vector<8x256xf32> to vector<1x8x256xf32>
    tpu.vector_store %arg7[%c0_46, %c0_47, %c0_48], %65 {strides = array<i32>} : memref<1x8x256xf32, #tpu.memory_space<vmem>>, vector<1x8x256xf32>,
    return
  }
  func.func @transform_0(%arg0: i32) -> (i32, i32, i32) {
    %c0_i32 = arith.constant 0 : i32
    %c0_i32_0 = arith.constant 0 : i32
    %c0_i32_1 = arith.constant 0 : i32
    return %arg0, %c0_i32, %c0_i32_0 : i32, i32, i32
  }
  func.func @transform_1(%arg0: i32) -> (i32, i32) {
    %c0_i32 = arith.constant 0 : i32
    %c0_i32_0 = arith.constant 0 : i32
    %c0_i32_1 = arith.constant 0 : i32
    return %c0_i32, %c0_i32_0 : i32, i32
  }
  func.func @transform_2(%arg0: i32) -> (i32, i32) {
    %c0_i32 = arith.constant 0 : i32
    %c0_i32_0 = arith.constant 0 : i32
    %c0_i32_1 = arith.constant 0 : i32
    return %c0_i32, %c0_i32_0 : i32, i32
  }
  func.func @transform_3(%arg0: i32) -> (i32, i32) {
    %c0_i32 = arith.constant 0 : i32
    %c0_i32_0 = arith.constant 0 : i32
    %c0_i32_1 = arith.constant 0 : i32
    return %c0_i32, %c0_i32_0 : i32, i32
  }
  func.func @transform_4(%arg0: i32) -> (i32, i32) {
    %c0_i32 = arith.constant 0 : i32
    %c0_i32_0 = arith.constant 0 : i32
    %c0_i32_1 = arith.constant 0 : i32
    return %c0_i32, %c0_i32_0 : i32, i32
  }
  func.func @transform_5(%arg0: i32) -> (i32, i32) {
    %c0_i32 = arith.constant 0 : i32
    %c0_i32_0 = arith.constant 0 : i32
    %c0_i32_1 = arith.constant 0 : i32
    return %c0_i32, %c0_i32_0 : i32, i32
  }
  func.func @transform_6(%arg0: i32) -> (i32, i32, i32) {
    %c0_i32 = arith.constant 0 : i32
    %c0_i32_0 = arith.constant 0 : i32
    %c0_i32_1 = arith.constant 0 : i32
    return %arg0, %c0_i32, %c0_i32_0 : i32, i32, i32
  }
}

module attributes {stable_mosaic.version = 11 : i64} {
  func.func @_geo_conv_kernel(%arg0: i32, %arg1: memref<1x8x294xbf16, #tpu.memory_space<vmem>>, %arg2: memref<16x72xbf16, #tpu.memory_space<vmem>>, %arg3: memref<16x1xf32, #tpu.memory_space<vmem>>, %arg4: memref<1x16x256xf32, #tpu.memory_space<vmem>>, %arg5: memref<72x256xbf16, #tpu.memory_space<vmem>>) attributes {dimension_semantics = [#tpu.dimension_semantics<parallel>], iteration_bounds = array<i64: 2>, scalar_prefetch = 0 : i64, scratch_operands = 1 : i64, tpu.core_type = #tpu.core_type<tc>, window_params = [{transform_indices = @transform_0, window_bounds = array<i64: 1, 8, 294>}, {pipeline_mode = #tpu.pipeline_mode<synchronous>, transform_indices = @transform_1, window_bounds = array<i64: 16, 72>}, {pipeline_mode = #tpu.pipeline_mode<synchronous>, transform_indices = @transform_2, window_bounds = array<i64: 16, 1>}, {transform_indices = @transform_3, window_bounds = array<i64: 1, 16, 256>}]} {
    %c0 = arith.constant 0 : index
    %c0_0 = arith.constant 0 : index
    %c0_1 = arith.constant 0 : index
    %0 = vector.load %arg1[%c0, %c0_0, %c0_1] : memref<1x8x294xbf16, #tpu.memory_space<vmem>>, vector<1x8x256xbf16>
    %1 = vector.shape_cast %0 : vector<1x8x256xbf16> to vector<8x256xbf16>
    %c0_2 = arith.constant 0 : index
    %c0_3 = arith.constant 0 : index
    %2 = vector.load %arg5[%c0_2, %c0_3] : memref<72x256xbf16, #tpu.memory_space<vmem>>, vector<8x256xbf16>
    tpu.vector_store %arg5[%c0_2, %c0_3], %1 {strides = array<i32>} : memref<72x256xbf16, #tpu.memory_space<vmem>>, vector<8x256xbf16>,
    %c0_4 = arith.constant 0 : index
    %c0_5 = arith.constant 0 : index
    %c1 = arith.constant 1 : index
    %3 = vector.load %arg1[%c0_4, %c0_5, %c1] : memref<1x8x294xbf16, #tpu.memory_space<vmem>>, vector<1x8x256xbf16>
    %4 = vector.shape_cast %3 : vector<1x8x256xbf16> to vector<8x256xbf16>
    %c8 = arith.constant 8 : index
    %c0_6 = arith.constant 0 : index
    %5 = vector.load %arg5[%c8, %c0_6] : memref<72x256xbf16, #tpu.memory_space<vmem>>, vector<8x256xbf16>
    tpu.vector_store %arg5[%c8, %c0_6], %4 {strides = array<i32>} : memref<72x256xbf16, #tpu.memory_space<vmem>>, vector<8x256xbf16>,
    %c0_7 = arith.constant 0 : index
    %c0_8 = arith.constant 0 : index
    %c2 = arith.constant 2 : index
    %6 = vector.load %arg1[%c0_7, %c0_8, %c2] : memref<1x8x294xbf16, #tpu.memory_space<vmem>>, vector<1x8x256xbf16>
    %7 = vector.shape_cast %6 : vector<1x8x256xbf16> to vector<8x256xbf16>
    %c16 = arith.constant 16 : index
    %c0_9 = arith.constant 0 : index
    %8 = vector.load %arg5[%c16, %c0_9] : memref<72x256xbf16, #tpu.memory_space<vmem>>, vector<8x256xbf16>
    tpu.vector_store %arg5[%c16, %c0_9], %7 {strides = array<i32>} : memref<72x256xbf16, #tpu.memory_space<vmem>>, vector<8x256xbf16>,
    %c0_10 = arith.constant 0 : index
    %c0_11 = arith.constant 0 : index
    %c18 = arith.constant 18 : index
    %9 = vector.load %arg1[%c0_10, %c0_11, %c18] : memref<1x8x294xbf16, #tpu.memory_space<vmem>>, vector<1x8x256xbf16>
    %10 = vector.shape_cast %9 : vector<1x8x256xbf16> to vector<8x256xbf16>
    %c24 = arith.constant 24 : index
    %c0_12 = arith.constant 0 : index
    %11 = vector.load %arg5[%c24, %c0_12] : memref<72x256xbf16, #tpu.memory_space<vmem>>, vector<8x256xbf16>
    tpu.vector_store %arg5[%c24, %c0_12], %10 {strides = array<i32>} : memref<72x256xbf16, #tpu.memory_space<vmem>>, vector<8x256xbf16>,
    %c0_13 = arith.constant 0 : index
    %c0_14 = arith.constant 0 : index
    %c19 = arith.constant 19 : index
    %12 = vector.load %arg1[%c0_13, %c0_14, %c19] : memref<1x8x294xbf16, #tpu.memory_space<vmem>>, vector<1x8x256xbf16>
    %13 = vector.shape_cast %12 : vector<1x8x256xbf16> to vector<8x256xbf16>
    %c32 = arith.constant 32 : index
    %c0_15 = arith.constant 0 : index
    %14 = vector.load %arg5[%c32, %c0_15] : memref<72x256xbf16, #tpu.memory_space<vmem>>, vector<8x256xbf16>
    tpu.vector_store %arg5[%c32, %c0_15], %13 {strides = array<i32>} : memref<72x256xbf16, #tpu.memory_space<vmem>>, vector<8x256xbf16>,
    %c0_16 = arith.constant 0 : index
    %c0_17 = arith.constant 0 : index
    %c20 = arith.constant 20 : index
    %15 = vector.load %arg1[%c0_16, %c0_17, %c20] : memref<1x8x294xbf16, #tpu.memory_space<vmem>>, vector<1x8x256xbf16>
    %16 = vector.shape_cast %15 : vector<1x8x256xbf16> to vector<8x256xbf16>
    %c40 = arith.constant 40 : index
    %c0_18 = arith.constant 0 : index
    %17 = vector.load %arg5[%c40, %c0_18] : memref<72x256xbf16, #tpu.memory_space<vmem>>, vector<8x256xbf16>
    tpu.vector_store %arg5[%c40, %c0_18], %16 {strides = array<i32>} : memref<72x256xbf16, #tpu.memory_space<vmem>>, vector<8x256xbf16>,
    %c0_19 = arith.constant 0 : index
    %c0_20 = arith.constant 0 : index
    %c36 = arith.constant 36 : index
    %18 = vector.load %arg1[%c0_19, %c0_20, %c36] : memref<1x8x294xbf16, #tpu.memory_space<vmem>>, vector<1x8x256xbf16>
    %19 = vector.shape_cast %18 : vector<1x8x256xbf16> to vector<8x256xbf16>
    %c48 = arith.constant 48 : index
    %c0_21 = arith.constant 0 : index
    %20 = vector.load %arg5[%c48, %c0_21] : memref<72x256xbf16, #tpu.memory_space<vmem>>, vector<8x256xbf16>
    tpu.vector_store %arg5[%c48, %c0_21], %19 {strides = array<i32>} : memref<72x256xbf16, #tpu.memory_space<vmem>>, vector<8x256xbf16>,
    %c0_22 = arith.constant 0 : index
    %c0_23 = arith.constant 0 : index
    %c37 = arith.constant 37 : index
    %21 = vector.load %arg1[%c0_22, %c0_23, %c37] : memref<1x8x294xbf16, #tpu.memory_space<vmem>>, vector<1x8x256xbf16>
    %22 = vector.shape_cast %21 : vector<1x8x256xbf16> to vector<8x256xbf16>
    %c56 = arith.constant 56 : index
    %c0_24 = arith.constant 0 : index
    %23 = vector.load %arg5[%c56, %c0_24] : memref<72x256xbf16, #tpu.memory_space<vmem>>, vector<8x256xbf16>
    tpu.vector_store %arg5[%c56, %c0_24], %22 {strides = array<i32>} : memref<72x256xbf16, #tpu.memory_space<vmem>>, vector<8x256xbf16>,
    %c0_25 = arith.constant 0 : index
    %c0_26 = arith.constant 0 : index
    %c38 = arith.constant 38 : index
    %24 = vector.load %arg1[%c0_25, %c0_26, %c38] : memref<1x8x294xbf16, #tpu.memory_space<vmem>>, vector<1x8x256xbf16>
    %25 = vector.shape_cast %24 : vector<1x8x256xbf16> to vector<8x256xbf16>
    %c64 = arith.constant 64 : index
    %c0_27 = arith.constant 0 : index
    %26 = vector.load %arg5[%c64, %c0_27] : memref<72x256xbf16, #tpu.memory_space<vmem>>, vector<8x256xbf16>
    tpu.vector_store %arg5[%c64, %c0_27], %25 {strides = array<i32>} : memref<72x256xbf16, #tpu.memory_space<vmem>>, vector<8x256xbf16>,
    %c0_28 = arith.constant 0 : index
    %c0_29 = arith.constant 0 : index
    %27 = vector.load %arg2[%c0_28, %c0_29] : memref<16x72xbf16, #tpu.memory_space<vmem>>, vector<16x72xbf16>
    %c0_30 = arith.constant 0 : index
    %c0_31 = arith.constant 0 : index
    %28 = vector.load %arg5[%c0_30, %c0_31] : memref<72x256xbf16, #tpu.memory_space<vmem>>, vector<72x256xbf16>
    %cst = arith.constant dense<0.000000e+00> : vector<16x256xf32>
    %29 = tpu.matmul %27, %28, %cst {dimension_numbers = #tpu.dot_dimension_numbers<[1], [0], [0], [1], [0, 0, 1, 1], [], []>} : vector<16x72xbf16>, vector<72x256xbf16>, vector<16x256xf32> -> vector<16x256xf32>
    %c0_32 = arith.constant 0 : index
    %c0_33 = arith.constant 0 : index
    %30 = vector.load %arg3[%c0_32, %c0_33] : memref<16x1xf32, #tpu.memory_space<vmem>>, vector<16x1xf32>
    %31 = vector.broadcast %30 : vector<16x1xf32> to vector<16x256xf32>
    %32 = arith.addf %29, %31 : vector<16x256xf32>
    %33 = arith.negf %32 : vector<16x256xf32>
    %34 = math.exp %33 : vector<16x256xf32>
    %cst_34 = arith.constant 1.000000e+00 : f32
    %35 = vector.broadcast %cst_34 : f32 to vector<16x256xf32>
    %36 = arith.addf %35, %34 : vector<16x256xf32>
    %37 = arith.divf %35, %36 : vector<16x256xf32>
    %38 = arith.mulf %32, %37 : vector<16x256xf32>
    %c0_35 = arith.constant 0 : index
    %c0_36 = arith.constant 0 : index
    %c0_37 = arith.constant 0 : index
    %39 = vector.load %arg4[%c0_35, %c0_36, %c0_37] : memref<1x16x256xf32, #tpu.memory_space<vmem>>, vector<1x16x256xf32>
    %40 = vector.shape_cast %39 : vector<1x16x256xf32> to vector<16x256xf32>
    %41 = vector.shape_cast %38 : vector<16x256xf32> to vector<1x16x256xf32>
    tpu.vector_store %arg4[%c0_35, %c0_36, %c0_37], %41 {strides = array<i32>} : memref<1x16x256xf32, #tpu.memory_space<vmem>>, vector<1x16x256xf32>,
    return
  }
  func.func @transform_0(%arg0: i32) -> (i32, i32, i32) {
    %c0_i32 = arith.constant 0 : i32
    %c0_i32_0 = arith.constant 0 : i32
    %c0_i32_1 = arith.constant 0 : i32
    return %arg0, %c0_i32, %c0_i32_0 : i32, i32, i32
  }
  func.func @transform_1(%arg0: i32) -> (i32, i32) {
    %c0_i32 = arith.constant 0 : i32
    %c0_i32_0 = arith.constant 0 : i32
    %c0_i32_1 = arith.constant 0 : i32
    return %c0_i32, %c0_i32_0 : i32, i32
  }
  func.func @transform_2(%arg0: i32) -> (i32, i32) {
    %c0_i32 = arith.constant 0 : i32
    %c0_i32_0 = arith.constant 0 : i32
    %c0_i32_1 = arith.constant 0 : i32
    return %c0_i32, %c0_i32_0 : i32, i32
  }
  func.func @transform_3(%arg0: i32) -> (i32, i32, i32) {
    %c0_i32 = arith.constant 0 : i32
    %c0_i32_0 = arith.constant 0 : i32
    %c0_i32_1 = arith.constant 0 : i32
    return %arg0, %c0_i32, %c0_i32_0 : i32, i32, i32
  }
}

module attributes {stable_mosaic.version = 11 : i64} {
  func.func @_geo_conv_kernel(%arg0: i32, %arg1: memref<1x8x294xbf16, #tpu.memory_space<vmem>>, %arg2: memref<8x72xbf16, #tpu.memory_space<vmem>>, %arg3: memref<8x1xf32, #tpu.memory_space<vmem>>, %arg4: memref<1x8x256xf32, #tpu.memory_space<vmem>>, %arg5: memref<1x8x256xf32, #tpu.memory_space<vmem>>, %arg6: memref<72x256xbf16, #tpu.memory_space<vmem>>) attributes {dimension_semantics = [#tpu.dimension_semantics<parallel>], iteration_bounds = array<i64: 2>, scalar_prefetch = 0 : i64, scratch_operands = 1 : i64, tpu.core_type = #tpu.core_type<tc>, window_params = [{transform_indices = @transform_0, window_bounds = array<i64: 1, 8, 294>}, {pipeline_mode = #tpu.pipeline_mode<synchronous>, transform_indices = @transform_1, window_bounds = array<i64: 8, 72>}, {pipeline_mode = #tpu.pipeline_mode<synchronous>, transform_indices = @transform_2, window_bounds = array<i64: 8, 1>}, {transform_indices = @transform_3, window_bounds = array<i64: 1, 8, 256>}, {transform_indices = @transform_4, window_bounds = array<i64: 1, 8, 256>}]} {
    %c0 = arith.constant 0 : index
    %c0_0 = arith.constant 0 : index
    %c0_1 = arith.constant 0 : index
    %0 = vector.load %arg1[%c0, %c0_0, %c0_1] : memref<1x8x294xbf16, #tpu.memory_space<vmem>>, vector<1x8x256xbf16>
    %1 = vector.shape_cast %0 : vector<1x8x256xbf16> to vector<8x256xbf16>
    %c0_2 = arith.constant 0 : index
    %c0_3 = arith.constant 0 : index
    %2 = vector.load %arg6[%c0_2, %c0_3] : memref<72x256xbf16, #tpu.memory_space<vmem>>, vector<8x256xbf16>
    tpu.vector_store %arg6[%c0_2, %c0_3], %1 {strides = array<i32>} : memref<72x256xbf16, #tpu.memory_space<vmem>>, vector<8x256xbf16>,
    %c0_4 = arith.constant 0 : index
    %c0_5 = arith.constant 0 : index
    %c1 = arith.constant 1 : index
    %3 = vector.load %arg1[%c0_4, %c0_5, %c1] : memref<1x8x294xbf16, #tpu.memory_space<vmem>>, vector<1x8x256xbf16>
    %4 = vector.shape_cast %3 : vector<1x8x256xbf16> to vector<8x256xbf16>
    %c8 = arith.constant 8 : index
    %c0_6 = arith.constant 0 : index
    %5 = vector.load %arg6[%c8, %c0_6] : memref<72x256xbf16, #tpu.memory_space<vmem>>, vector<8x256xbf16>
    tpu.vector_store %arg6[%c8, %c0_6], %4 {strides = array<i32>} : memref<72x256xbf16, #tpu.memory_space<vmem>>, vector<8x256xbf16>,
    %c0_7 = arith.constant 0 : index
    %c0_8 = arith.constant 0 : index
    %c2 = arith.constant 2 : index
    %6 = vector.load %arg1[%c0_7, %c0_8, %c2] : memref<1x8x294xbf16, #tpu.memory_space<vmem>>, vector<1x8x256xbf16>
    %7 = vector.shape_cast %6 : vector<1x8x256xbf16> to vector<8x256xbf16>
    %c16 = arith.constant 16 : index
    %c0_9 = arith.constant 0 : index
    %8 = vector.load %arg6[%c16, %c0_9] : memref<72x256xbf16, #tpu.memory_space<vmem>>, vector<8x256xbf16>
    tpu.vector_store %arg6[%c16, %c0_9], %7 {strides = array<i32>} : memref<72x256xbf16, #tpu.memory_space<vmem>>, vector<8x256xbf16>,
    %c0_10 = arith.constant 0 : index
    %c0_11 = arith.constant 0 : index
    %c18 = arith.constant 18 : index
    %9 = vector.load %arg1[%c0_10, %c0_11, %c18] : memref<1x8x294xbf16, #tpu.memory_space<vmem>>, vector<1x8x256xbf16>
    %10 = vector.shape_cast %9 : vector<1x8x256xbf16> to vector<8x256xbf16>
    %c24 = arith.constant 24 : index
    %c0_12 = arith.constant 0 : index
    %11 = vector.load %arg6[%c24, %c0_12] : memref<72x256xbf16, #tpu.memory_space<vmem>>, vector<8x256xbf16>
    tpu.vector_store %arg6[%c24, %c0_12], %10 {strides = array<i32>} : memref<72x256xbf16, #tpu.memory_space<vmem>>, vector<8x256xbf16>,
    %c0_13 = arith.constant 0 : index
    %c0_14 = arith.constant 0 : index
    %c19 = arith.constant 19 : index
    %12 = vector.load %arg1[%c0_13, %c0_14, %c19] : memref<1x8x294xbf16, #tpu.memory_space<vmem>>, vector<1x8x256xbf16>
    %13 = vector.shape_cast %12 : vector<1x8x256xbf16> to vector<8x256xbf16>
    %c32 = arith.constant 32 : index
    %c0_15 = arith.constant 0 : index
    %14 = vector.load %arg6[%c32, %c0_15] : memref<72x256xbf16, #tpu.memory_space<vmem>>, vector<8x256xbf16>
    tpu.vector_store %arg6[%c32, %c0_15], %13 {strides = array<i32>} : memref<72x256xbf16, #tpu.memory_space<vmem>>, vector<8x256xbf16>,
    %c0_16 = arith.constant 0 : index
    %c0_17 = arith.constant 0 : index
    %c20 = arith.constant 20 : index
    %15 = vector.load %arg1[%c0_16, %c0_17, %c20] : memref<1x8x294xbf16, #tpu.memory_space<vmem>>, vector<1x8x256xbf16>
    %16 = vector.shape_cast %15 : vector<1x8x256xbf16> to vector<8x256xbf16>
    %c40 = arith.constant 40 : index
    %c0_18 = arith.constant 0 : index
    %17 = vector.load %arg6[%c40, %c0_18] : memref<72x256xbf16, #tpu.memory_space<vmem>>, vector<8x256xbf16>
    tpu.vector_store %arg6[%c40, %c0_18], %16 {strides = array<i32>} : memref<72x256xbf16, #tpu.memory_space<vmem>>, vector<8x256xbf16>,
    %c0_19 = arith.constant 0 : index
    %c0_20 = arith.constant 0 : index
    %c36 = arith.constant 36 : index
    %18 = vector.load %arg1[%c0_19, %c0_20, %c36] : memref<1x8x294xbf16, #tpu.memory_space<vmem>>, vector<1x8x256xbf16>
    %19 = vector.shape_cast %18 : vector<1x8x256xbf16> to vector<8x256xbf16>
    %c48 = arith.constant 48 : index
    %c0_21 = arith.constant 0 : index
    %20 = vector.load %arg6[%c48, %c0_21] : memref<72x256xbf16, #tpu.memory_space<vmem>>, vector<8x256xbf16>
    tpu.vector_store %arg6[%c48, %c0_21], %19 {strides = array<i32>} : memref<72x256xbf16, #tpu.memory_space<vmem>>, vector<8x256xbf16>,
    %c0_22 = arith.constant 0 : index
    %c0_23 = arith.constant 0 : index
    %c37 = arith.constant 37 : index
    %21 = vector.load %arg1[%c0_22, %c0_23, %c37] : memref<1x8x294xbf16, #tpu.memory_space<vmem>>, vector<1x8x256xbf16>
    %22 = vector.shape_cast %21 : vector<1x8x256xbf16> to vector<8x256xbf16>
    %c56 = arith.constant 56 : index
    %c0_24 = arith.constant 0 : index
    %23 = vector.load %arg6[%c56, %c0_24] : memref<72x256xbf16, #tpu.memory_space<vmem>>, vector<8x256xbf16>
    tpu.vector_store %arg6[%c56, %c0_24], %22 {strides = array<i32>} : memref<72x256xbf16, #tpu.memory_space<vmem>>, vector<8x256xbf16>,
    %c0_25 = arith.constant 0 : index
    %c0_26 = arith.constant 0 : index
    %c38 = arith.constant 38 : index
    %24 = vector.load %arg1[%c0_25, %c0_26, %c38] : memref<1x8x294xbf16, #tpu.memory_space<vmem>>, vector<1x8x256xbf16>
    %25 = vector.shape_cast %24 : vector<1x8x256xbf16> to vector<8x256xbf16>
    %c64 = arith.constant 64 : index
    %c0_27 = arith.constant 0 : index
    %26 = vector.load %arg6[%c64, %c0_27] : memref<72x256xbf16, #tpu.memory_space<vmem>>, vector<8x256xbf16>
    tpu.vector_store %arg6[%c64, %c0_27], %25 {strides = array<i32>} : memref<72x256xbf16, #tpu.memory_space<vmem>>, vector<8x256xbf16>,
    %c0_28 = arith.constant 0 : index
    %c0_29 = arith.constant 0 : index
    %27 = vector.load %arg2[%c0_28, %c0_29] : memref<8x72xbf16, #tpu.memory_space<vmem>>, vector<8x72xbf16>
    %c0_30 = arith.constant 0 : index
    %c0_31 = arith.constant 0 : index
    %28 = vector.load %arg6[%c0_30, %c0_31] : memref<72x256xbf16, #tpu.memory_space<vmem>>, vector<72x256xbf16>
    %cst = arith.constant dense<0.000000e+00> : vector<8x256xf32>
    %29 = tpu.matmul %27, %28, %cst {dimension_numbers = #tpu.dot_dimension_numbers<[1], [0], [0], [1], [0, 0, 1, 1], [], []>} : vector<8x72xbf16>, vector<72x256xbf16>, vector<8x256xf32> -> vector<8x256xf32>
    %c0_32 = arith.constant 0 : index
    %c0_33 = arith.constant 0 : index
    %30 = vector.load %arg3[%c0_32, %c0_33] : memref<8x1xf32, #tpu.memory_space<vmem>>, vector<8x1xf32>
    %31 = vector.broadcast %30 : vector<8x1xf32> to vector<8x256xf32>
    %32 = arith.addf %29, %31 : vector<8x256xf32>
    %33 = arith.negf %32 : vector<8x256xf32>
    %34 = math.exp %33 : vector<8x256xf32>
    %cst_34 = arith.constant 1.000000e+00 : f32
    %35 = vector.broadcast %cst_34 : f32 to vector<8x256xf32>
    %36 = arith.addf %35, %34 : vector<8x256xf32>
    %37 = arith.divf %35, %36 : vector<8x256xf32>
    %38 = arith.mulf %32, %37 : vector<8x256xf32>
    %c0_35 = arith.constant 0 : index
    %c0_36 = arith.constant 0 : index
    %c0_37 = arith.constant 0 : index
    %39 = vector.load %arg4[%c0_35, %c0_36, %c0_37] : memref<1x8x256xf32, #tpu.memory_space<vmem>>, vector<1x8x256xf32>
    %40 = vector.shape_cast %39 : vector<1x8x256xf32> to vector<8x256xf32>
    %cst_38 = arith.constant 0.00493683573 : f32
    %41 = vector.broadcast %cst_38 : f32 to vector<8x256xf32>
    %42 = arith.mulf %41, %38 : vector<8x256xf32>
    %43 = arith.addf %40, %42 : vector<8x256xf32>
    %c0_39 = arith.constant 0 : index
    %c0_40 = arith.constant 0 : index
    %c0_41 = arith.constant 0 : index
    %44 = vector.load %arg5[%c0_39, %c0_40, %c0_41] : memref<1x8x256xf32, #tpu.memory_space<vmem>>, vector<1x8x256xf32>
    %45 = vector.shape_cast %44 : vector<1x8x256xf32> to vector<8x256xf32>
    %46 = vector.shape_cast %43 : vector<8x256xf32> to vector<1x8x256xf32>
    tpu.vector_store %arg5[%c0_39, %c0_40, %c0_41], %46 {strides = array<i32>} : memref<1x8x256xf32, #tpu.memory_space<vmem>>, vector<1x8x256xf32>,
    return
  }
  func.func @transform_0(%arg0: i32) -> (i32, i32, i32) {
    %c0_i32 = arith.constant 0 : i32
    %c0_i32_0 = arith.constant 0 : i32
    %c0_i32_1 = arith.constant 0 : i32
    return %arg0, %c0_i32, %c0_i32_0 : i32, i32, i32
  }
  func.func @transform_1(%arg0: i32) -> (i32, i32) {
    %c0_i32 = arith.constant 0 : i32
    %c0_i32_0 = arith.constant 0 : i32
    %c0_i32_1 = arith.constant 0 : i32
    return %c0_i32, %c0_i32_0 : i32, i32
  }
  func.func @transform_2(%arg0: i32) -> (i32, i32) {
    %c0_i32 = arith.constant 0 : i32
    %c0_i32_0 = arith.constant 0 : i32
    %c0_i32_1 = arith.constant 0 : i32
    return %c0_i32, %c0_i32_0 : i32, i32
  }
  func.func @transform_3(%arg0: i32) -> (i32, i32, i32) {
    %c0_i32 = arith.constant 0 : i32
    %c0_i32_0 = arith.constant 0 : i32
    %c0_i32_1 = arith.constant 0 : i32
    return %arg0, %c0_i32, %c0_i32_0 : i32, i32, i32
  }
  func.func @transform_4(%arg0: i32) -> (i32, i32, i32) {
    %c0_i32 = arith.constant 0 : i32
    %c0_i32_0 = arith.constant 0 : i32
    %c0_i32_1 = arith.constant 0 : i32
    return %arg0, %c0_i32, %c0_i32_0 : i32, i32, i32
  }
}

module attributes {stable_mosaic.version = 11 : i64} {
  func.func @_geo_conv_kernel(%arg0: i32, %arg1: memref<1x8x294xbf16, #tpu.memory_space<vmem>>, %arg2: memref<8x72xbf16, #tpu.memory_space<vmem>>, %arg3: memref<8x1xf32, #tpu.memory_space<vmem>>, %arg4: memref<1x8x256xf32, #tpu.memory_space<vmem>>, %arg5: memref<72x256xbf16, #tpu.memory_space<vmem>>) attributes {dimension_semantics = [#tpu.dimension_semantics<parallel>], iteration_bounds = array<i64: 2>, scalar_prefetch = 0 : i64, scratch_operands = 1 : i64, tpu.core_type = #tpu.core_type<tc>, window_params = [{transform_indices = @transform_0, window_bounds = array<i64: 1, 8, 294>}, {pipeline_mode = #tpu.pipeline_mode<synchronous>, transform_indices = @transform_1, window_bounds = array<i64: 8, 72>}, {pipeline_mode = #tpu.pipeline_mode<synchronous>, transform_indices = @transform_2, window_bounds = array<i64: 8, 1>}, {transform_indices = @transform_3, window_bounds = array<i64: 1, 8, 256>}]} {
    %c0 = arith.constant 0 : index
    %c0_0 = arith.constant 0 : index
    %c0_1 = arith.constant 0 : index
    %0 = vector.load %arg1[%c0, %c0_0, %c0_1] : memref<1x8x294xbf16, #tpu.memory_space<vmem>>, vector<1x8x256xbf16>
    %1 = vector.shape_cast %0 : vector<1x8x256xbf16> to vector<8x256xbf16>
    %c0_2 = arith.constant 0 : index
    %c0_3 = arith.constant 0 : index
    %2 = vector.load %arg5[%c0_2, %c0_3] : memref<72x256xbf16, #tpu.memory_space<vmem>>, vector<8x256xbf16>
    tpu.vector_store %arg5[%c0_2, %c0_3], %1 {strides = array<i32>} : memref<72x256xbf16, #tpu.memory_space<vmem>>, vector<8x256xbf16>,
    %c0_4 = arith.constant 0 : index
    %c0_5 = arith.constant 0 : index
    %c1 = arith.constant 1 : index
    %3 = vector.load %arg1[%c0_4, %c0_5, %c1] : memref<1x8x294xbf16, #tpu.memory_space<vmem>>, vector<1x8x256xbf16>
    %4 = vector.shape_cast %3 : vector<1x8x256xbf16> to vector<8x256xbf16>
    %c8 = arith.constant 8 : index
    %c0_6 = arith.constant 0 : index
    %5 = vector.load %arg5[%c8, %c0_6] : memref<72x256xbf16, #tpu.memory_space<vmem>>, vector<8x256xbf16>
    tpu.vector_store %arg5[%c8, %c0_6], %4 {strides = array<i32>} : memref<72x256xbf16, #tpu.memory_space<vmem>>, vector<8x256xbf16>,
    %c0_7 = arith.constant 0 : index
    %c0_8 = arith.constant 0 : index
    %c2 = arith.constant 2 : index
    %6 = vector.load %arg1[%c0_7, %c0_8, %c2] : memref<1x8x294xbf16, #tpu.memory_space<vmem>>, vector<1x8x256xbf16>
    %7 = vector.shape_cast %6 : vector<1x8x256xbf16> to vector<8x256xbf16>
    %c16 = arith.constant 16 : index
    %c0_9 = arith.constant 0 : index
    %8 = vector.load %arg5[%c16, %c0_9] : memref<72x256xbf16, #tpu.memory_space<vmem>>, vector<8x256xbf16>
    tpu.vector_store %arg5[%c16, %c0_9], %7 {strides = array<i32>} : memref<72x256xbf16, #tpu.memory_space<vmem>>, vector<8x256xbf16>,
    %c0_10 = arith.constant 0 : index
    %c0_11 = arith.constant 0 : index
    %c18 = arith.constant 18 : index
    %9 = vector.load %arg1[%c0_10, %c0_11, %c18] : memref<1x8x294xbf16, #tpu.memory_space<vmem>>, vector<1x8x256xbf16>
    %10 = vector.shape_cast %9 : vector<1x8x256xbf16> to vector<8x256xbf16>
    %c24 = arith.constant 24 : index
    %c0_12 = arith.constant 0 : index
    %11 = vector.load %arg5[%c24, %c0_12] : memref<72x256xbf16, #tpu.memory_space<vmem>>, vector<8x256xbf16>
    tpu.vector_store %arg5[%c24, %c0_12], %10 {strides = array<i32>} : memref<72x256xbf16, #tpu.memory_space<vmem>>, vector<8x256xbf16>,
    %c0_13 = arith.constant 0 : index
    %c0_14 = arith.constant 0 : index
    %c19 = arith.constant 19 : index
    %12 = vector.load %arg1[%c0_13, %c0_14, %c19] : memref<1x8x294xbf16, #tpu.memory_space<vmem>>, vector<1x8x256xbf16>
    %13 = vector.shape_cast %12 : vector<1x8x256xbf16> to vector<8x256xbf16>
    %c32 = arith.constant 32 : index
    %c0_15 = arith.constant 0 : index
    %14 = vector.load %arg5[%c32, %c0_15] : memref<72x256xbf16, #tpu.memory_space<vmem>>, vector<8x256xbf16>
    tpu.vector_store %arg5[%c32, %c0_15], %13 {strides = array<i32>} : memref<72x256xbf16, #tpu.memory_space<vmem>>, vector<8x256xbf16>,
    %c0_16 = arith.constant 0 : index
    %c0_17 = arith.constant 0 : index
    %c20 = arith.constant 20 : index
    %15 = vector.load %arg1[%c0_16, %c0_17, %c20] : memref<1x8x294xbf16, #tpu.memory_space<vmem>>, vector<1x8x256xbf16>
    %16 = vector.shape_cast %15 : vector<1x8x256xbf16> to vector<8x256xbf16>
    %c40 = arith.constant 40 : index
    %c0_18 = arith.constant 0 : index
    %17 = vector.load %arg5[%c40, %c0_18] : memref<72x256xbf16, #tpu.memory_space<vmem>>, vector<8x256xbf16>
    tpu.vector_store %arg5[%c40, %c0_18], %16 {strides = array<i32>} : memref<72x256xbf16, #tpu.memory_space<vmem>>, vector<8x256xbf16>,
    %c0_19 = arith.constant 0 : index
    %c0_20 = arith.constant 0 : index
    %c36 = arith.constant 36 : index
    %18 = vector.load %arg1[%c0_19, %c0_20, %c36] : memref<1x8x294xbf16, #tpu.memory_space<vmem>>, vector<1x8x256xbf16>
    %19 = vector.shape_cast %18 : vector<1x8x256xbf16> to vector<8x256xbf16>
    %c48 = arith.constant 48 : index
    %c0_21 = arith.constant 0 : index
    %20 = vector.load %arg5[%c48, %c0_21] : memref<72x256xbf16, #tpu.memory_space<vmem>>, vector<8x256xbf16>
    tpu.vector_store %arg5[%c48, %c0_21], %19 {strides = array<i32>} : memref<72x256xbf16, #tpu.memory_space<vmem>>, vector<8x256xbf16>,
    %c0_22 = arith.constant 0 : index
    %c0_23 = arith.constant 0 : index
    %c37 = arith.constant 37 : index
    %21 = vector.load %arg1[%c0_22, %c0_23, %c37] : memref<1x8x294xbf16, #tpu.memory_space<vmem>>, vector<1x8x256xbf16>
    %22 = vector.shape_cast %21 : vector<1x8x256xbf16> to vector<8x256xbf16>
    %c56 = arith.constant 56 : index
    %c0_24 = arith.constant 0 : index
    %23 = vector.load %arg5[%c56, %c0_24] : memref<72x256xbf16, #tpu.memory_space<vmem>>, vector<8x256xbf16>
    tpu.vector_store %arg5[%c56, %c0_24], %22 {strides = array<i32>} : memref<72x256xbf16, #tpu.memory_space<vmem>>, vector<8x256xbf16>,
    %c0_25 = arith.constant 0 : index
    %c0_26 = arith.constant 0 : index
    %c38 = arith.constant 38 : index
    %24 = vector.load %arg1[%c0_25, %c0_26, %c38] : memref<1x8x294xbf16, #tpu.memory_space<vmem>>, vector<1x8x256xbf16>
    %25 = vector.shape_cast %24 : vector<1x8x256xbf16> to vector<8x256xbf16>
    %c64 = arith.constant 64 : index
    %c0_27 = arith.constant 0 : index
    %26 = vector.load %arg5[%c64, %c0_27] : memref<72x256xbf16, #tpu.memory_space<vmem>>, vector<8x256xbf16>
    tpu.vector_store %arg5[%c64, %c0_27], %25 {strides = array<i32>} : memref<72x256xbf16, #tpu.memory_space<vmem>>, vector<8x256xbf16>,
    %c0_28 = arith.constant 0 : index
    %c0_29 = arith.constant 0 : index
    %27 = vector.load %arg2[%c0_28, %c0_29] : memref<8x72xbf16, #tpu.memory_space<vmem>>, vector<8x72xbf16>
    %c0_30 = arith.constant 0 : index
    %c0_31 = arith.constant 0 : index
    %28 = vector.load %arg5[%c0_30, %c0_31] : memref<72x256xbf16, #tpu.memory_space<vmem>>, vector<72x256xbf16>
    %cst = arith.constant dense<0.000000e+00> : vector<8x256xf32>
    %29 = tpu.matmul %27, %28, %cst {dimension_numbers = #tpu.dot_dimension_numbers<[1], [0], [0], [1], [0, 0, 1, 1], [], []>} : vector<8x72xbf16>, vector<72x256xbf16>, vector<8x256xf32> -> vector<8x256xf32>
    %c0_32 = arith.constant 0 : index
    %c0_33 = arith.constant 0 : index
    %30 = vector.load %arg3[%c0_32, %c0_33] : memref<8x1xf32, #tpu.memory_space<vmem>>, vector<8x1xf32>
    %31 = vector.broadcast %30 : vector<8x1xf32> to vector<8x256xf32>
    %32 = arith.addf %29, %31 : vector<8x256xf32>
    %c0_34 = arith.constant 0 : index
    %c0_35 = arith.constant 0 : index
    %c0_36 = arith.constant 0 : index
    %33 = vector.load %arg4[%c0_34, %c0_35, %c0_36] : memref<1x8x256xf32, #tpu.memory_space<vmem>>, vector<1x8x256xf32>
    %34 = vector.shape_cast %33 : vector<1x8x256xf32> to vector<8x256xf32>
    %35 = vector.shape_cast %32 : vector<8x256xf32> to vector<1x8x256xf32>
    tpu.vector_store %arg4[%c0_34, %c0_35, %c0_36], %35 {strides = array<i32>} : memref<1x8x256xf32, #tpu.memory_space<vmem>>, vector<1x8x256xf32>,
    return
  }
  func.func @transform_0(%arg0: i32) -> (i32, i32, i32) {
    %c0_i32 = arith.constant 0 : i32
    %c0_i32_0 = arith.constant 0 : i32
    %c0_i32_1 = arith.constant 0 : i32
    return %arg0, %c0_i32, %c0_i32_0 : i32, i32, i32
  }
  func.func @transform_1(%arg0: i32) -> (i32, i32) {
    %c0_i32 = arith.constant 0 : i32
    %c0_i32_0 = arith.constant 0 : i32
    %c0_i32_1 = arith.constant 0 : i32
    return %c0_i32, %c0_i32_0 : i32, i32
  }
  func.func @transform_2(%arg0: i32) -> (i32, i32) {
    %c0_i32 = arith.constant 0 : i32
    %c0_i32_0 = arith.constant 0 : i32
    %c0_i32_1 = arith.constant 0 : i32
    return %c0_i32, %c0_i32_0 : i32, i32
  }
  func.func @transform_3(%arg0: i32) -> (i32, i32, i32) {
    %c0_i32 = arith.constant 0 : i32
    %c0_i32_0 = arith.constant 0 : i32
    %c0_i32_1 = arith.constant 0 : i32
    return %arg0, %c0_i32, %c0_i32_0 : i32, i32, i32
  }
}

</mosaic_0001>

<bundles_post_ra>
// kernel: paradis_forward.7
= control target key start
LH: loop header
LB: loop body
LE: loop exit
PB: predicated region body
PF: predicated region fallthrough
CT: control target
= control target key end

     0   :  { %s720_s21 = smov 0   ;;  %s798_s0 = inlined_call_operand.vmem [shape: bf16[2,8,294], index: 0, kind: input, shape index: {}]   ;;  %s799_s1 = inlined_call_operand.vmem [shape: bf16[8,72], index: 1, kind: input, shape index: {}]   ;;  %s800_s2 = inlined_call_operand.vmem [shape: f32[8,1], index: 2, kind: input, shape index: {}]   ;;  %s801_s3 = inlined_call_operand.vmem [shape: f32[8,256], index: 3, kind: input, shape index: {}]   ;;  %s802_s4 = inlined_call_operand.vmem [shape: f32[8,256], index: 4, kind: input, shape index: {}]   ;;  %s803_s5 = inlined_call_operand.vmem [shape: f32[8,256], index: 5, kind: input, shape index: {}]   ;;  %s804_s6 = inlined_call_operand.vmem [shape: f32[2,8,256], index: 6, kind: output, shape index: {}]  }
   0x1 LB: > { %s608_s22 = sadd.s32 4294967295, %s674_s21   ;;  %p612_p0 = scmp.ge.s32.totalorder %s674_s21, 1  ;;  %s674_s21 = sphi %s720_s21, %s16_s21  }
   0x2   : > { %p212_p1 = scmp.lt.s32.totalorder %s674_s21, 3 }
   0x4   : > { %p213_p2 = pnand %p612_p0, %p212_p1 }
   0x5   : > { %p242_p3 = scmp.lt.s32.totalorder (!%p213_p2), %s608_s22, 1  ;;  %s676_s27 = smov (!%p213_p2), 90  }
   0x6   : > { %216 = sbr.rel (%p213_p2) target bundleno = 893 (0x37d), region = 44  ;;  %s677_s28 = smov (!%p213_p2), 92  }
   0x7   : > { %s678_s29 = smov (!%p213_p2), 91   ;;  %s679_s30 = smov (!%p213_p2), 109  }
   0x8   : > { %s680_s7 = smov (!%p213_p2), 108   ;;  %s681_s8 = smov (!%p213_p2), 126  }
   0x9   : > { %s683_s9 = smov (!%p213_p2), 110   ;;  %s684_s10 = smov (!%p213_p2), 127  }
   0xb   : > { %s806_s22 = smov (!%p242_p3, %s608_s22), 1  ;;  %v682_v8 = vmov 0   ;;  %v386_v10 = vld [vmem:[%s800_s2] sm:$0xff]  ;;  %vm265_vm0 = vcmask 1043456   ;;  %vm372_vm1 = vcmask 736256   ;;  %vm342_vm2 = vcmask 752640  }
   0xc   : > { %s633_s23 = smul.u32 12, %s806_s22  ;;  %480 = vmatprep.mubr.bf16.mxu0 %v682_v8  ;;  %657 = vset.pattern.permute.xlu0 %v682_v8  ;;  %vm357_vm3 = vcmask 744448   ;;  %vm312_vm4 = vcmask 891904   ;;  %vm327_vm5 = vcmask 883712   ;;  %vm282_vm6 = vcmask 1031168   ;;  %s632_s11 = sshll.u32 %s806_s22, 4 }
   0xd   : > { %vm297_vm7 = vcmask 900096   ;;  %vm267_vm8 = vcmask 1039360   ;;  %vm437_vm9 = vcmask 588800   ;;  %s251_s14 = scalar_lea.vmem %s804_s6, %s632_s11 }
   0xe   : > { %s734_s26 = scalar_lea.vmem %s798_s0, %s633_s23 }
   0xf   : > { %v737_v0 = vld [vmem:[%s734_s26] sm:$0xff]  ;;  %v362_v1 = vld [vmem:[%s734_s26 + $0x8] sm:$0xf] }
  0x10   : > { %365 = vrot.lane.b32.xlu0 %v737_v0, %s676_s27  ;;  %335 = vrot.lane.b32.xlu1 %v737_v0, %s677_s28  ;;  %v332_v2 = vld [vmem:[%s734_s26 + $0x8] sm:$0xf] }
  0x11   : > { %v347_v3 = vld [vmem:[%s734_s26 + $0x8] sm:$0xf] }
  0x12   : > { %v302_v4 = vld [vmem:[%s734_s26 + $0x8] sm:$0xf] }
  0x13   : > { %v317_v5 = vld [vmem:[%s734_s26 + $0x8] sm:$0xf] }
  0x14   : > { %367 = vrot.lane.b32.xlu0 %v362_v1, %s676_s27  ;;  %337 = vrot.lane.b32.xlu1 %v332_v2, %s677_s28  ;;  %v272_v6 = vld [vmem:[%s734_s26 + $0x8] sm:$0xf] }
  0x15   : > { %v287_v7 = vld [vmem:[%s734_s26 + $0x8] sm:$0xf] }
  0x16   : > { %v256_v9 = vld [vmem:[%s734_s26 + $0x8] sm:$0xf] }
  0x18   : > { %350 = vrot.lane.b32.xlu0 %v737_v0, %s678_s29  ;;  %352 = vrot.lane.b32.xlu1 %v347_v3, %s678_s29 }
  0x1c   : > { %307 = vrot.lane.b32.xlu1 %v302_v4, %s679_s30  ;;  %305 = vrot.lane.b32.xlu0 %v737_v0, %s679_s30 }
  0x20   : > { %322 = vrot.lane.b32.xlu1 %v317_v5, %s680_s7  ;;  %320 = vrot.lane.b32.xlu0 %v737_v0, %s680_s7 }
  0x24   : > { %277 = vrot.lane.b32.xlu1 %v272_v6, %s681_s8  ;;  %275 = vrot.lane.b32.xlu0 %v737_v0, %s681_s8 }
  0x28   : > { %292 = vrot.lane.b32.xlu1 %v287_v7, %s683_s9  ;;  %290 = vrot.lane.b32.xlu0 %v737_v0, %s683_s9  ;;  %v376_v7 = vld [vmem:[%s799_s1] sm:$0xf] }
  0x2c   : > { %261 = vrot.lane.b32.xlu1 %v256_v9, %s684_s10  ;;  %259 = vrot.lane.b32.xlu0 %v737_v0, %s684_s10 }
  0x30   : > { %389 = vperm.xlu0 %657, %v386_v10  }
  0x82   : > { %v366_v11 = vpop.permute.xlu0 %365  ;;  %v336_v12 = vpop.permute.xlu1 %335 }
  0x83   : > { %v369_v15 = vrot.slane %v366_v11, 4  ;;  %v339_v18 = vrot.slane %v336_v12, 4 }
  0x86   : > { %v368_v13 = vpop.permute.xlu0 %367  ;;  %v338_v14 = vpop.permute.xlu1 %337 }
  0x87   : > { %v370_v16 = vrot.slane %v368_v13, 4  ;;  %v340_v17 = vrot.slane %v338_v14, 4 }
  0x89   : > { %v371_v19 = vsel %vm265_vm0, %v369_v15, %v370_v16  ;;  %v341_v20 = vsel %vm265_vm0, %v339_v18, %v340_v17 }
  0x8a   : > { %v351_v21 = vpop.permute.xlu0 %350  ;;  %v353_v22 = vpop.permute.xlu1 %352  ;;  %v373_v23 = vsel %vm372_vm1, %v366_v11, %v371_v19  ;;  %v343_v32 = vsel %vm342_vm2, %v336_v12, %v341_v20  ;;  %v489_v11 = vld [vmem:[%s803_s5] sm:$0xff] }
  0x8b   : > { %v354_v24 = vrot.slane %v351_v21, 4  ;;  %v355_v25 = vrot.slane %v353_v22, 4  ;;  %v625_v26 = vcombine.high %v373_v23, %v373_v23  ;;  %v624_v27 = vcombine.low %v373_v23, %v373_v23 }
  0x8d   : > { %v356_v28 = vsel %vm265_vm0, %v354_v24, %v355_v25  ;;  %626 = vmatprep.subr.msk.bf16.mxu0 %vm265_vm0, %v625_v26  ;;  %v443_v29 = vsel %vm265_vm0, %v624_v27, 0 }
  0x8e   : > { %455 = vmatpush1.bf16.msra.mxu0 %v443_v29  ;;  %v308_v30 = vpop.permute.xlu1 %307  ;;  %v306_v31 = vpop.permute.xlu0 %305  ;;  %v358_v33 = vsel %vm357_vm3, %v351_v21, %v356_v28 }
  0x8f   : > { %v310_v34 = vrot.slane %v308_v30, 4  ;;  %v309_v35 = vrot.slane %v306_v31, 4  ;;  %v623_v36 = vcombine.high %v343_v32, %v358_v33  ;;  %v622_v37 = vcombine.low %v343_v32, %v358_v33 }
  0x91   : > { %456 = vmatprep.subr.bf16.mxu0 %v623_v36  ;;  %v311_v40 = vsel %vm265_vm0, %v309_v35, %v310_v34 }
  0x92   : > { %457 = vmatpush1.bf16.msra.mxu0 %v622_v37  ;;  %v323_v38 = vpop.permute.xlu1 %322  ;;  %v321_v39 = vpop.permute.xlu0 %320  ;;  %v313_v44 = vsel %vm312_vm4, %v306_v31, %v311_v40 }
  0x93   : > { %v325_v41 = vrot.slane %v323_v38, 4  ;;  %v324_v42 = vrot.slane %v321_v39, 4 }
  0x95   : > { %v326_v43 = vsel %vm265_vm0, %v324_v42, %v325_v41 }
  0x96   : > { %v328_v45 = vsel %vm327_vm5, %v321_v39, %v326_v43  ;;  %v278_v46 = vpop.permute.xlu1 %277  ;;  %v276_v47 = vpop.permute.xlu0 %275 }
  0x97   : > { %v620_v48 = vcombine.low %v313_v44, %v328_v45  ;;  %v621_v49 = vcombine.high %v313_v44, %v328_v45  ;;  %v280_v50 = vrot.slane %v278_v46, 4  ;;  %v279_v51 = vrot.slane %v276_v47, 4  ;;  %v529_v44 = vld [vmem:[%s801_s3] sm:$0xff]  ;;  %v530_v45 = vld [vmem:[%s801_s3 + $0x8] sm:$0xff] }
  0x99   : > { %458 = vmatprep.subr.bf16.mxu0 %v621_v49  ;;  %v281_v54 = vsel %vm265_vm0, %v279_v51, %v280_v50  ;;  %v534_v49 = vld [vmem:[%s802_s4 + $0x8] sm:$0xff] }
  0x9a   : > { %459 = vmatpush1.bf16.msra.mxu0 %v620_v48  ;;  %v293_v52 = vpop.permute.xlu1 %292  ;;  %v291_v53 = vpop.permute.xlu0 %290  ;;  %v283_v58 = vsel %vm282_vm6, %v276_v47, %v281_v54  ;;  %v533_v48 = vld [vmem:[%s802_s4] sm:$0xff] }
  0x9b   : > { %v295_v55 = vrot.slane %v293_v52, 4  ;;  %v294_v56 = vrot.slane %v291_v53, 4 }
  0x9d   : > { %v296_v57 = vsel %vm265_vm0, %v294_v56, %v295_v55 }
  0x9e   : > { %v298_v59 = vsel %vm297_vm7, %v291_v53, %v296_v57  ;;  %v262_v60 = vpop.permute.xlu1 %261  ;;  %v260_v61 = vpop.permute.xlu0 %259 }
  0x9f   : > { %v618_v62 = vcombine.low %v283_v58, %v298_v59  ;;  %v619_v63 = vcombine.high %v283_v58, %v298_v59  ;;  %v264_v1 = vrot.slane %v262_v60, 4  ;;  %v263_v2 = vrot.slane %v260_v61, 4 }
  0xa1   : > { %v266_v3 = vsel %vm265_vm0, %v263_v2, %v264_v1  ;;  %460 = vmatprep.subr.bf16.mxu0 %v619_v63 }
  0xa2   : > { %v268_v4 = vsel %vm267_vm8, %v260_v61, %v266_v3  ;;  %461 = vmatpush1.bf16.msra.mxu0 %v618_v62 }
  0xa3   : > { %v616_v5 = vcombine.low %v737_v0, %v268_v4  ;;  %v617_v6 = vcombine.high %v737_v0, %v268_v4  ;;  %v490_v0 = vld [vmem:[%s803_s5 + $0x8] sm:$0xff] }
  0xa5   : > { %462 = vmatprep.subr.bf16.mxu0 %v617_v6 }
  0xa6   : > { %463 = vmatpush1.bf16.msra.mxu0 %v616_v5 }
  0xa9   : > { %627 = vmatmul.mubr.msk.bf16.vlgmr.msra.gmra.mxu0 %vm437_vm9, %v376_v7 }
  0xab   : > { %v390_v8 = vpop.permute.xlu0 %389 }
 0x169   : > { %v482_v9 = vpop.f32.mrf.mxu0 }
 0x16a   : > { %v483_v10 = vadd.f32 %v482_v9, %v390_v8 }
 0x16b   : > { %v484_v12 = vpop.f32.mrf.mxu0 }
 0x16c   : > { %v485_v13 = vadd.f32 %v484_v12, %v390_v8  ;;  %v491_v15 = vmul.f32 %v489_v11, %v483_v10 }
 0x16d   : > { %v486_v14 = vpop.f32.mrf.mxu0 }
 0x16e   : > { %v492_v16 = vmul.f32 %v490_v0, %v485_v13 }
 0x16f   : > { %v487_v17 = vpop.f32.mrf.mxu0 }
 0x170   : > { %v493_v18 = vadd.f32 %v492_v16, %v491_v15 }
 0x172   : > { %494 = vadd.xlane.f32.xlu1 %v493_v18 }
 0x1fb   : > { %v495_v19 = vpop.xlane.xlu1 %494 }
 0x1fc   : > { %v496_v20 = vrot.slane %v495_v19, 4 }
 0x1fe   : > { %v497_v21 = vadd.f32 %v496_v20, %v495_v19 }
 0x200   : > { %v498_v22 = vrot.slane %v497_v21, 2 }
 0x202   : > { %v499_v23 = vadd.f32 %v498_v22, %v497_v21 }
 0x204   : > { %v500_v24 = vrot.slane %v499_v23, 1 }
 0x206   : > { %v501_v25 = vadd.f32 %v500_v24, %v499_v23 }
 0x208   : > { %634 = vpush %v501_v25 }
 0x239   : > { %s635_s19 = spop %634 }
 0x23a   : > { %s503_s20 = smul.f32 0.0009765625, %s635_s19 }
 0x23c   : > { %v504_v26 = vstv %s503_s20 }
 0x23d   : > { %v505_v27 = vsub.f32 %v483_v10, %v504_v26  ;;  %v506_v28 = vsub.f32 %v485_v13, %v504_v26 }
 0x23f   : > { %v507_v29 = vmul.f32 %v505_v27, %v505_v27  ;;  %v508_v30 = vmul.f32 %v506_v28, %v506_v28 }
 0x241   : > { %v509_v31 = vmul.f32 %v507_v29, %v489_v11  ;;  %v510_v32 = vmul.f32 %v508_v30, %v490_v0 }
 0x243   : > { %v511_v33 = vadd.f32 %v510_v32, %v509_v31 }
 0x245   : > { %512 = vadd.xlane.f32.xlu0 %v511_v33 }
 0x2ce   : > { %v513_v34 = vpop.xlane.xlu0 %512 }
 0x2cf   : > { %v514_v35 = vrot.slane %v513_v34, 4 }
 0x2d1   : > { %v515_v36 = vadd.f32 %v514_v35, %v513_v34 }
 0x2d3   : > { %v516_v37 = vrot.slane %v515_v36, 2 }
 0x2d5   : > { %v517_v38 = vadd.f32 %v516_v37, %v515_v36 }
 0x2d7   : > { %v518_v39 = vrot.slane %v517_v38, 1 }
 0x2d9   : > { %v519_v40 = vadd.f32 %v518_v39, %v517_v38 }
 0x2db   : > { %636 = vpush %v519_v40 }
 0x30c   : > { %s637_s23 = spop %636 }
 0x30d   : > { %s521_s24 = smul.f32 0.0009765625, %s637_s23 }
 0x30f   : > { %s522_s25 = sadd.f32 1e-05, %s521_s24 }
 0x311   : > { %v523_v41 = vstv %s522_s25 }
 0x312   : > { %658 = vrsqrt.f32 %v523_v41 }
 0x31f   : > { %v659_v42 = vpop.eup %658 }
 0x320   : > { %638 = vpush %v659_v42 }
 0x351   : > { %s639_s26 = spop %638 }
 0x352   : > { %v526_v43 = vstv %s639_s26 }
 0x353   : > { %v527_v46 = vmul.f32 %v526_v43, %v505_v27  ;;  %v528_v47 = vmul.f32 %v526_v43, %v506_v28 }
 0x355   : > { %v531_v50 = vmul.f32 %v529_v44, %v527_v46  ;;  %v532_v51 = vmul.f32 %v530_v45, %v528_v47 }
 0x357   : > { %v535_v52 = vadd.f32 %v533_v48, %v531_v50  ;;  %v536_v53 = vadd.f32 %v534_v49, %v532_v51 }
 0x359   : > { %v628_v54 = vmul.f32 -1.442695, %v535_v52  ;;  %v629_v55 = vmul.f32 -1.442695, %v536_v53 }
 0x35b   : > { %660 = vpow2.f32 %v628_v54 }
 0x35c   : > { %662 = vpow2.f32 %v629_v55 }
 0x368   : > { %v661_v56 = vpop.eup %660 }
 0x369   : > { %v663_v57 = vpop.eup %662  ;;  %v543_v58 = vadd.f32 1.0, %v661_v56 }
 0x36a   : > { %v544_v59 = vadd.f32 1.0, %v663_v57 }
 0x36b   : > { %664 = vrcp.f32 %v543_v58 }
 0x36c   : > { %666 = vrcp.f32 %v544_v59 }
 0x378   : > { %v665_v60 = vpop.eup %664 }
 0x379   : > { %v667_v61 = vpop.eup %666  ;;  %v549_v62 = vmul.f32 %v665_v60, %v535_v52 }
 0x37a   : > { %v550_v63 = vmul.f32 %v667_v61, %v536_v53 }
 0x37b   : > { %551 = vst [vmem:[%s251_s14] sm:$0xff] %v549_v62 }
 0x37c   : > { %552 = vst [vmem:[%s251_s14 + $0x8] sm:$0xff] %v550_v63 }
 0x37d PF: > { %s16_s21 = sadd.s32 1, %s674_s21  }
 0x37e   : > { %p13_p4 = scmp.ge.s32.totalorder %s16_s21, 4  }
 0x380   :  { %15 = sbr.rel (!%p13_p4) target bundleno = 1 (0x1), region = 74 }

// kernel: paradis_forward.8
= control target key start
LH: loop header
LB: loop body
LE: loop exit
PB: predicated region body
PF: predicated region fallthrough
CT: control target
= control target key end

     0   :  { %s568_s12 = smov 0   ;;  %s628_s0 = inlined_call_operand.vmem [shape: bf16[2,8,294], index: 0, kind: input, shape index: {}]   ;;  %s629_s1 = inlined_call_operand.vmem [shape: bf16[8,72], index: 1, kind: input, shape index: {}]   ;;  %s630_s2 = inlined_call_operand.vmem [shape: f32[8,1], index: 2, kind: input, shape index: {}]   ;;  %s631_s3 = inlined_call_operand.vmem [shape: f32[2,8,256], index: 3, kind: output, shape index: {}]  }
   0x1 LB: > { %s479_s13 = sadd.s32 4294967295, %s537_s12   ;;  %p483_p0 = scmp.ge.s32.totalorder %s537_s12, 1  ;;  %s537_s12 = sphi %s568_s12, %s13_s12  }
   0x2   : > { %p137_p1 = scmp.lt.s32.totalorder %s537_s12, 3 }
   0x4   : > { %p138_p2 = pnand %p483_p0, %p137_p1 }
   0x5   : > { %p161_p3 = scmp.lt.s32.totalorder (!%p138_p2), %s479_s13, 1  ;;  %s539_s18 = smov (!%p138_p2), 90  }
   0x6   : > { %141 = sbr.rel (%p138_p2) target bundleno = 401 (0x191), region = 32  ;;  %s540_s19 = smov (!%p138_p2), 92  }
   0x7   : > { %s541_s20 = smov (!%p138_p2), 91   ;;  %s542_s21 = smov (!%p138_p2), 109  }
   0x8   : > { %s543_s22 = smov (!%p138_p2), 108   ;;  %s544_s23 = smov (!%p138_p2), 126  }
   0x9   : > { %s546_s24 = smov (!%p138_p2), 110   ;;  %s547_s25 = smov (!%p138_p2), 127  }
   0xb   : > { %s633_s13 = smov (!%p161_p3, %s479_s13), 1  ;;  %v545_v8 = vmov 0   ;;  %v305_v10 = vld [vmem:[%s630_s2] sm:$0xff]  ;;  %vm184_vm0 = vcmask 1043456   ;;  %vm291_vm1 = vcmask 736256   ;;  %vm261_vm2 = vcmask 752640  }
   0xc   : > { %s504_s14 = smul.u32 12, %s633_s13  ;;  %399 = vmatprep.mubr.bf16.mxu0 %v545_v8  ;;  %522 = vset.pattern.permute.xlu0 %v545_v8  ;;  %vm276_vm3 = vcmask 744448   ;;  %vm231_vm4 = vcmask 891904   ;;  %vm246_vm5 = vcmask 883712   ;;  %vm201_vm6 = vcmask 1031168   ;;  %s503_s30 = sshll.u32 %s633_s13, 4 }
   0xd   : > { %vm216_vm7 = vcmask 900096   ;;  %vm186_vm8 = vcmask 1039360   ;;  %vm356_vm9 = vcmask 588800   ;;  %s170_s6 = scalar_lea.vmem %s631_s3, %s503_s30 }
   0xe   : > { %s582_s17 = scalar_lea.vmem %s628_s0, %s504_s14 }
   0xf   : > { %v585_v0 = vld [vmem:[%s582_s17] sm:$0xff]  ;;  %v281_v1 = vld [vmem:[%s582_s17 + $0x8] sm:$0xf] }
  0x10   : > { %284 = vrot.lane.b32.xlu0 %v585_v0, %s539_s18  ;;  %254 = vrot.lane.b32.xlu1 %v585_v0, %s540_s19  ;;  %v251_v2 = vld [vmem:[%s582_s17 + $0x8] sm:$0xf] }
  0x11   : > { %v266_v3 = vld [vmem:[%s582_s17 + $0x8] sm:$0xf] }
  0x12   : > { %v221_v4 = vld [vmem:[%s582_s17 + $0x8] sm:$0xf] }
  0x13   : > { %v236_v5 = vld [vmem:[%s582_s17 + $0x8] sm:$0xf] }
  0x14   : > { %286 = vrot.lane.b32.xlu0 %v281_v1, %s539_s18  ;;  %256 = vrot.lane.b32.xlu1 %v251_v2, %s540_s19  ;;  %v191_v6 = vld [vmem:[%s582_s17 + $0x8] sm:$0xf] }
  0x15   : > { %v206_v7 = vld [vmem:[%s582_s17 + $0x8] sm:$0xf] }
  0x16   : > { %v175_v9 = vld [vmem:[%s582_s17 + $0x8] sm:$0xf] }
  0x18   : > { %269 = vrot.lane.b32.xlu0 %v585_v0, %s541_s20  ;;  %271 = vrot.lane.b32.xlu1 %v266_v3, %s541_s20 }
  0x1c   : > { %226 = vrot.lane.b32.xlu1 %v221_v4, %s542_s21  ;;  %224 = vrot.lane.b32.xlu0 %v585_v0, %s542_s21 }
  0x20   : > { %241 = vrot.lane.b32.xlu1 %v236_v5, %s543_s22  ;;  %239 = vrot.lane.b32.xlu0 %v585_v0, %s543_s22 }
  0x24   : > { %196 = vrot.lane.b32.xlu1 %v191_v6, %s544_s23  ;;  %194 = vrot.lane.b32.xlu0 %v585_v0, %s544_s23 }
  0x28   : > { %211 = vrot.lane.b32.xlu1 %v206_v7, %s546_s24  ;;  %209 = vrot.lane.b32.xlu0 %v585_v0, %s546_s24  ;;  %v295_v7 = vld [vmem:[%s629_s1] sm:$0xf] }
  0x2c   : > { %180 = vrot.lane.b32.xlu1 %v175_v9, %s547_s25  ;;  %178 = vrot.lane.b32.xlu0 %v585_v0, %s547_s25 }
  0x30   : > { %308 = vperm.xlu0 %522, %v305_v10  }
  0x82   : > { %v285_v11 = vpop.permute.xlu0 %284  ;;  %v255_v12 = vpop.permute.xlu1 %254 }
  0x83   : > { %v288_v15 = vrot.slane %v285_v11, 4  ;;  %v258_v18 = vrot.slane %v255_v12, 4 }
  0x86   : > { %v287_v13 = vpop.permute.xlu0 %286  ;;  %v257_v14 = vpop.permute.xlu1 %256 }
  0x87   : > { %v289_v16 = vrot.slane %v287_v13, 4  ;;  %v259_v17 = vrot.slane %v257_v14, 4 }
  0x89   : > { %v290_v19 = vsel %vm184_vm0, %v288_v15, %v289_v16  ;;  %v260_v20 = vsel %vm184_vm0, %v258_v18, %v259_v17 }
  0x8a   : > { %v270_v21 = vpop.permute.xlu0 %269  ;;  %v272_v22 = vpop.permute.xlu1 %271  ;;  %v292_v23 = vsel %vm291_vm1, %v285_v11, %v290_v19  ;;  %v262_v32 = vsel %vm261_vm2, %v255_v12, %v260_v20 }
  0x8b   : > { %v273_v24 = vrot.slane %v270_v21, 4  ;;  %v274_v25 = vrot.slane %v272_v22, 4  ;;  %v496_v26 = vcombine.high %v292_v23, %v292_v23  ;;  %v495_v27 = vcombine.low %v292_v23, %v292_v23 }
  0x8d   : > { %v275_v28 = vsel %vm184_vm0, %v273_v24, %v274_v25  ;;  %497 = vmatprep.subr.msk.bf16.mxu0 %vm184_vm0, %v496_v26  ;;  %v362_v29 = vsel %vm184_vm0, %v495_v27, 0 }
  0x8e   : > { %374 = vmatpush1.bf16.msra.mxu0 %v362_v29  ;;  %v227_v30 = vpop.permute.xlu1 %226  ;;  %v225_v31 = vpop.permute.xlu0 %224  ;;  %v277_v33 = vsel %vm276_vm3, %v270_v21, %v275_v28 }
  0x8f   : > { %v229_v34 = vrot.slane %v227_v30, 4  ;;  %v228_v35 = vrot.slane %v225_v31, 4  ;;  %v494_v36 = vcombine.high %v262_v32, %v277_v33  ;;  %v493_v37 = vcombine.low %v262_v32, %v277_v33 }
  0x91   : > { %375 = vmatprep.subr.bf16.mxu0 %v494_v36  ;;  %v230_v40 = vsel %vm184_vm0, %v228_v35, %v229_v34 }
  0x92   : > { %376 = vmatpush1.bf16.msra.mxu0 %v493_v37  ;;  %v242_v38 = vpop.permute.xlu1 %241  ;;  %v240_v39 = vpop.permute.xlu0 %239  ;;  %v232_v44 = vsel %vm231_vm4, %v225_v31, %v230_v40 }
  0x93   : > { %v244_v41 = vrot.slane %v242_v38, 4  ;;  %v243_v42 = vrot.slane %v240_v39, 4 }
  0x95   : > { %v245_v43 = vsel %vm184_vm0, %v243_v42, %v244_v41 }
  0x96   : > { %v247_v45 = vsel %vm246_vm5, %v240_v39, %v245_v43  ;;  %v197_v46 = vpop.permute.xlu1 %196  ;;  %v195_v47 = vpop.permute.xlu0 %194 }
  0x97   : > { %v491_v48 = vcombine.low %v232_v44, %v247_v45  ;;  %v492_v49 = vcombine.high %v232_v44, %v247_v45  ;;  %v199_v50 = vrot.slane %v197_v46, 4  ;;  %v198_v51 = vrot.slane %v195_v47, 4 }
  0x99   : > { %377 = vmatprep.subr.bf16.mxu0 %v492_v49  ;;  %v200_v54 = vsel %vm184_vm0, %v198_v51, %v199_v50 }
  0x9a   : > { %378 = vmatpush1.bf16.msra.mxu0 %v491_v48  ;;  %v212_v52 = vpop.permute.xlu1 %211  ;;  %v210_v53 = vpop.permute.xlu0 %209  ;;  %v202_v58 = vsel %vm201_vm6, %v195_v47, %v200_v54 }
  0x9b   : > { %v214_v55 = vrot.slane %v212_v52, 4  ;;  %v213_v56 = vrot.slane %v210_v53, 4 }
  0x9d   : > { %v215_v57 = vsel %vm184_vm0, %v213_v56, %v214_v55 }
  0x9e   : > { %v217_v59 = vsel %vm216_vm7, %v210_v53, %v215_v57  ;;  %v181_v60 = vpop.permute.xlu1 %180  ;;  %v179_v61 = vpop.permute.xlu0 %178 }
  0x9f   : > { %v489_v62 = vcombine.low %v202_v58, %v217_v59  ;;  %v490_v63 = vcombine.high %v202_v58, %v217_v59  ;;  %v183_v1 = vrot.slane %v181_v60, 4  ;;  %v182_v2 = vrot.slane %v179_v61, 4 }
  0xa1   : > { %v185_v3 = vsel %vm184_vm0, %v182_v2, %v183_v1  ;;  %379 = vmatprep.subr.bf16.mxu0 %v490_v63 }
  0xa2   : > { %v187_v4 = vsel %vm186_vm8, %v179_v61, %v185_v3  ;;  %380 = vmatpush1.bf16.msra.mxu0 %v489_v62 }
  0xa3   : > { %v487_v5 = vcombine.low %v585_v0, %v187_v4  ;;  %v488_v6 = vcombine.high %v585_v0, %v187_v4 }
  0xa5   : > { %381 = vmatprep.subr.bf16.mxu0 %v488_v6 }
  0xa6   : > { %382 = vmatpush1.bf16.msra.mxu0 %v487_v5 }
  0xa9   : > { %498 = vmatmul.mubr.msk.bf16.vlgmr.msra.gmra.mxu0 %vm356_vm9, %v295_v7 }
  0xab   : > { %v309_v8 = vpop.permute.xlu0 %308 }
 0x169   : > { %v401_v9 = vpop.f32.mrf.mxu0 }
 0x16a   : > { %v402_v10 = vadd.f32 %v401_v9, %v309_v8 }
 0x16b   : > { %v403_v11 = vpop.f32.mrf.mxu0 }
 0x16c   : > { %v499_v12 = vmul.f32 -1.442695, %v402_v10  ;;  %v404_v13 = vadd.f32 %v403_v11, %v309_v8 }
 0x16d   : > { %v405_v14 = vpop.f32.mrf.mxu0 }
 0x16e   : > { %523 = vpow2.f32 %v499_v12  ;;  %v500_v15 = vmul.f32 -1.442695, %v404_v13 }
 0x16f   : > { %v406_v16 = vpop.f32.mrf.mxu0 }
 0x170   : > { %525 = vpow2.f32 %v500_v15 }
 0x17b   : > { %v524_v0 = vpop.eup %523 }
 0x17c   : > { %v414_v17 = vadd.f32 1.0, %v524_v0 }
 0x17d   : > { %v526_v18 = vpop.eup %525 }
 0x17e   : > { %527 = vrcp.f32 %v414_v17  ;;  %v415_v19 = vadd.f32 1.0, %v526_v18 }
 0x180   : > { %529 = vrcp.f32 %v415_v19 }
 0x18b   : > { %v528_v20 = vpop.eup %527 }
 0x18c   : > { %v420_v21 = vmul.f32 %v528_v20, %v402_v10 }
 0x18d   : > { %v530_v22 = vpop.eup %529 }
 0x18e   : > { %422 = vst [vmem:[%s170_s6] sm:$0xff] %v420_v21  ;;  %v421_v23 = vmul.f32 %v530_v22, %v404_v13 }
 0x190   : > { %423 = vst [vmem:[%s170_s6 + $0x8] sm:$0xff] %v421_v23 }
 0x191 PF: > { %s13_s12 = sadd.s32 1, %s537_s12  }
 0x192   : > { %p10_p4 = scmp.ge.s32.totalorder %s13_s12, 4  }
 0x194   :  { %12 = sbr.rel (!%p10_p4) target bundleno = 1 (0x1), region = 62 }

// kernel: paradis_forward.10
= control target key start
LH: loop header
LB: loop body
LE: loop exit
PB: predicated region body
PF: predicated region fallthrough
CT: control target
= control target key end

     0   :  { %s611_s12 = smov 0   ;;  %s674_s0 = inlined_call_operand.vmem [shape: bf16[2,8,294], index: 0, kind: input, shape index: {}]   ;;  %s675_s1 = inlined_call_operand.vmem [shape: bf16[16,72], index: 1, kind: input, shape index: {}]   ;;  %s676_s2 = inlined_call_operand.vmem [shape: f32[16,1], index: 2, kind: input, shape index: {}]   ;;  %s677_s3 = inlined_call_operand.vmem [shape: f32[2,16,256], index: 3, kind: output, shape index: {}]  }
   0x1 LB: > { %s509_s13 = sadd.s32 4294967295, %s580_s12   ;;  %p513_p0 = scmp.ge.s32.totalorder %s580_s12, 1  ;;  %s580_s12 = sphi %s611_s12, %s13_s12  }
   0x2   : > { %p137_p1 = scmp.lt.s32.totalorder %s580_s12, 3 }
   0x4   : > { %p138_p2 = pnand %p513_p0, %p137_p1 }
   0x5   : > { %p161_p3 = scmp.lt.s32.totalorder (!%p138_p2), %s509_s13, 1  ;;  %s582_s18 = smov (!%p138_p2), 90  }
   0x6   : > { %141 = sbr.rel (%p138_p2) target bundleno = 405 (0x195), region = 32  ;;  %s583_s19 = smov (!%p138_p2), 92  }
   0x7   : > { %s584_s20 = smov (!%p138_p2), 91   ;;  %s585_s21 = smov (!%p138_p2), 109  }
   0x8   : > { %s586_s22 = smov (!%p138_p2), 108   ;;  %s587_s23 = smov (!%p138_p2), 126  }
   0x9   : > { %s589_s24 = smov (!%p138_p2), 110   ;;  %s590_s25 = smov (!%p138_p2), 127  }
   0xb   : > { %s679_s13 = smov (!%p161_p3, %s509_s13), 1  ;;  %v588_v8 = vmov 0   ;;  %v306_v10 = vld [vmem:[%s676_s2] sm:$0xff]  ;;  %v307_v11 = vld [vmem:[%s676_s2 + $0x8] sm:$0xff]  ;;  %vm184_vm0 = vcmask 1043456   ;;  %vm291_vm1 = vcmask 736256  }
   0xc   : > { %s537_s14 = smul.u32 12, %s679_s13  ;;  %411 = vmatprep.mubr.bf16.mxu0 %v588_v8  ;;  %555 = vset.pattern.permute.xlu0 %v588_v8  ;;  %vm261_vm2 = vcmask 752640   ;;  %vm276_vm3 = vcmask 744448   ;;  %vm231_vm4 = vcmask 891904   ;;  %vm246_vm5 = vcmask 883712   ;;  %s536_s5 = sshll.u32 %s679_s13, 5 }
   0xd   : > { %556 = vset.pattern.permute.xlu1 %v588_v8  ;;  %vm201_vm6 = vcmask 1031168   ;;  %vm216_vm7 = vcmask 900096   ;;  %vm186_vm8 = vcmask 1039360   ;;  %v557_v8 = vld [vmem:[%s675_s1] sm:$0xff]   ;;  %vm368_vm9 = vcmask 588800   ;;  %s170_s8 = scalar_lea.vmem %s677_s3, %s536_s5 }
   0xe   : > { %s625_s17 = scalar_lea.vmem %s674_s0, %s537_s14 }
   0xf   : > { %v628_v0 = vld [vmem:[%s625_s17] sm:$0xff]  ;;  %v281_v1 = vld [vmem:[%s625_s17 + $0x8] sm:$0xf] }
  0x10   : > { %284 = vrot.lane.b32.xlu0 %v628_v0, %s582_s18  ;;  %254 = vrot.lane.b32.xlu1 %v628_v0, %s583_s19  ;;  %v251_v2 = vld [vmem:[%s625_s17 + $0x8] sm:$0xf] }
  0x11   : > { %v266_v3 = vld [vmem:[%s625_s17 + $0x8] sm:$0xf] }
  0x12   : > { %v221_v4 = vld [vmem:[%s625_s17 + $0x8] sm:$0xf] }
  0x13   : > { %v236_v5 = vld [vmem:[%s625_s17 + $0x8] sm:$0xf] }
  0x14   : > { %286 = vrot.lane.b32.xlu0 %v281_v1, %s582_s18  ;;  %256 = vrot.lane.b32.xlu1 %v251_v2, %s583_s19  ;;  %v191_v6 = vld [vmem:[%s625_s17 + $0x8] sm:$0xf] }
  0x15   : > { %v206_v7 = vld [vmem:[%s625_s17 + $0x8] sm:$0xf] }
  0x16   : > { %v175_v9 = vld [vmem:[%s625_s17 + $0x8] sm:$0xf] }
  0x18   : > { %269 = vrot.lane.b32.xlu0 %v628_v0, %s584_s20  ;;  %271 = vrot.lane.b32.xlu1 %v266_v3, %s584_s20 }
  0x1c   : > { %226 = vrot.lane.b32.xlu1 %v221_v4, %s585_s21  ;;  %224 = vrot.lane.b32.xlu0 %v628_v0, %s585_s21 }
  0x20   : > { %241 = vrot.lane.b32.xlu1 %v236_v5, %s586_s22  ;;  %239 = vrot.lane.b32.xlu0 %v628_v0, %s586_s22 }
  0x24   : > { %196 = vrot.lane.b32.xlu1 %v191_v6, %s587_s23  ;;  %194 = vrot.lane.b32.xlu0 %v628_v0, %s587_s23 }
  0x28   : > { %211 = vrot.lane.b32.xlu1 %v206_v7, %s589_s24  ;;  %209 = vrot.lane.b32.xlu0 %v628_v0, %s589_s24 }
  0x2c   : > { %180 = vrot.lane.b32.xlu1 %v175_v9, %s590_s25  ;;  %178 = vrot.lane.b32.xlu0 %v628_v0, %s590_s25 }
  0x30   : > { %310 = vperm.xlu0 %555, %v306_v10   ;;  %315 = vperm.xlu1 %556, %v307_v11  }
  0x82   : > { %v285_v12 = vpop.permute.xlu0 %284  ;;  %v255_v13 = vpop.permute.xlu1 %254 }
  0x83   : > { %v288_v16 = vrot.slane %v285_v12, 4  ;;  %v258_v19 = vrot.slane %v255_v13, 4 }
  0x86   : > { %v287_v14 = vpop.permute.xlu0 %286  ;;  %v257_v15 = vpop.permute.xlu1 %256 }
  0x87   : > { %v289_v17 = vrot.slane %v287_v14, 4  ;;  %v259_v18 = vrot.slane %v257_v15, 4 }
  0x89   : > { %v290_v20 = vsel %vm184_vm0, %v288_v16, %v289_v17  ;;  %v260_v21 = vsel %vm184_vm0, %v258_v19, %v259_v18 }
  0x8a   : > { %v270_v22 = vpop.permute.xlu0 %269  ;;  %v272_v23 = vpop.permute.xlu1 %271  ;;  %v292_v24 = vsel %vm291_vm1, %v285_v12, %v290_v20  ;;  %v262_v33 = vsel %vm261_vm2, %v255_v13, %v260_v21 }
  0x8b   : > { %v273_v25 = vrot.slane %v270_v22, 4  ;;  %v274_v26 = vrot.slane %v272_v23, 4  ;;  %v527_v27 = vcombine.high %v292_v24, %v292_v24  ;;  %v526_v28 = vcombine.low %v292_v24, %v292_v24 }
  0x8d   : > { %v275_v29 = vsel %vm184_vm0, %v273_v25, %v274_v26  ;;  %528 = vmatprep.subr.msk.bf16.mxu0 %vm184_vm0, %v527_v27  ;;  %v374_v30 = vsel %vm184_vm0, %v526_v28, 0 }
  0x8e   : > { %386 = vmatpush1.bf16.msra.mxu0 %v374_v30  ;;  %v227_v31 = vpop.permute.xlu1 %226  ;;  %v225_v32 = vpop.permute.xlu0 %224  ;;  %v277_v34 = vsel %vm276_vm3, %v270_v22, %v275_v29 }
  0x8f   : > { %v229_v35 = vrot.slane %v227_v31, 4  ;;  %v228_v36 = vrot.slane %v225_v32, 4  ;;  %v525_v37 = vcombine.high %v262_v33, %v277_v34  ;;  %v524_v38 = vcombine.low %v262_v33, %v277_v34 }
  0x91   : > { %387 = vmatprep.subr.bf16.mxu0 %v525_v37  ;;  %v230_v41 = vsel %vm184_vm0, %v228_v36, %v229_v35 }
  0x92   : > { %388 = vmatpush1.bf16.msra.mxu0 %v524_v38  ;;  %v242_v39 = vpop.permute.xlu1 %241  ;;  %v240_v40 = vpop.permute.xlu0 %239  ;;  %v232_v45 = vsel %vm231_vm4, %v225_v32, %v230_v41 }
  0x93   : > { %v244_v42 = vrot.slane %v242_v39, 4  ;;  %v243_v43 = vrot.slane %v240_v40, 4 }
  0x95   : > { %v245_v44 = vsel %vm184_vm0, %v243_v43, %v244_v42 }
  0x96   : > { %v247_v46 = vsel %vm246_vm5, %v240_v40, %v245_v44  ;;  %v197_v47 = vpop.permute.xlu1 %196  ;;  %v195_v48 = vpop.permute.xlu0 %194 }
  0x97   : > { %v522_v49 = vcombine.low %v232_v45, %v247_v46  ;;  %v523_v50 = vcombine.high %v232_v45, %v247_v46  ;;  %v199_v51 = vrot.slane %v197_v47, 4  ;;  %v198_v52 = vrot.slane %v195_v48, 4 }
  0x99   : > { %389 = vmatprep.subr.bf16.mxu0 %v523_v50  ;;  %v200_v55 = vsel %vm184_vm0, %v198_v52, %v199_v51 }
  0x9a   : > { %390 = vmatpush1.bf16.msra.mxu0 %v522_v49  ;;  %v212_v53 = vpop.permute.xlu1 %211  ;;  %v210_v54 = vpop.permute.xlu0 %209  ;;  %v202_v59 = vsel %vm201_vm6, %v195_v48, %v200_v55 }
  0x9b   : > { %v214_v56 = vrot.slane %v212_v53, 4  ;;  %v213_v57 = vrot.slane %v210_v54, 4 }
  0x9d   : > { %v215_v58 = vsel %vm184_vm0, %v213_v57, %v214_v56 }
  0x9e   : > { %v217_v60 = vsel %vm216_vm7, %v210_v54, %v215_v58  ;;  %v181_v61 = vpop.permute.xlu1 %180  ;;  %v179_v62 = vpop.permute.xlu0 %178 }
  0x9f   : > { %v520_v63 = vcombine.low %v202_v59, %v217_v60  ;;  %v521_v1 = vcombine.high %v202_v59, %v217_v60  ;;  %v183_v2 = vrot.slane %v181_v61, 4  ;;  %v182_v3 = vrot.slane %v179_v62, 4 }
  0xa1   : > { %v185_v4 = vsel %vm184_vm0, %v182_v3, %v183_v2  ;;  %391 = vmatprep.subr.bf16.mxu0 %v521_v1 }
  0xa2   : > { %v187_v5 = vsel %vm186_vm8, %v179_v62, %v185_v4  ;;  %392 = vmatpush1.bf16.msra.mxu0 %v520_v63 }
  0xa3   : > { %v518_v6 = vcombine.low %v628_v0, %v187_v5  ;;  %v519_v7 = vcombine.high %v628_v0, %v187_v5 }
  0xa5   : > { %393 = vmatprep.subr.bf16.mxu0 %v519_v7 }
  0xa6   : > { %394 = vmatpush1.bf16.msra.mxu0 %v518_v6 }
  0xa9   : > { %529 = vmatmul.mubr.msk.bf16.vlgmr.msra.gmra.mxu0 %vm368_vm9, %v557_v8 }
  0xab   : > { %v311_v9 = vpop.permute.xlu0 %310  ;;  %v316_v13 = vpop.permute.xlu1 %315 }
 0x169   : > { %v413_v10 = vpop.f32.mrf.mxu0 }
 0x16a   : > { %v414_v11 = vadd.f32 %v413_v10, %v311_v9 }
 0x16b   : > { %v415_v12 = vpop.f32.mrf.mxu0 }
 0x16c   : > { %v530_v14 = vmul.f32 -1.442695, %v414_v11  ;;  %v416_v15 = vadd.f32 %v415_v12, %v311_v9 }
 0x16d   : > { %v417_v16 = vpop.f32.mrf.mxu0 }
 0x16e   : > { %558 = vpow2.f32 %v530_v14  ;;  %v531_v17 = vmul.f32 -1.442695, %v416_v15  ;;  %v418_v18 = vadd.f32 %v417_v16, %v316_v13 }
 0x16f   : > { %v419_v0 = vpop.f32.mrf.mxu0 }
 0x170   : > { %560 = vpow2.f32 %v531_v17  ;;  %v532_v19 = vmul.f32 -1.442695, %v418_v18  ;;  %v420_v20 = vadd.f32 %v419_v0, %v316_v13 }
 0x172   : > { %562 = vpow2.f32 %v532_v19  ;;  %v533_v21 = vmul.f32 -1.442695, %v420_v20 }
 0x174   : > { %564 = vpow2.f32 %v533_v21 }
 0x17b   : > { %v559_v22 = vpop.eup %558 }
 0x17c   : > { %v434_v23 = vadd.f32 1.0, %v559_v22 }
 0x17d   : > { %v561_v24 = vpop.eup %560 }
 0x17e   : > { %566 = vrcp.f32 %v434_v23  ;;  %v435_v25 = vadd.f32 1.0, %v561_v24 }
 0x17f   : > { %v563_v26 = vpop.eup %562 }
 0x180   : > { %568 = vrcp.f32 %v435_v25  ;;  %v436_v27 = vadd.f32 1.0, %v563_v26 }
 0x181   : > { %v565_v28 = vpop.eup %564 }
 0x182   : > { %570 = vrcp.f32 %v436_v27  ;;  %v437_v29 = vadd.f32 1.0, %v565_v28 }
 0x184   : > { %572 = vrcp.f32 %v437_v29 }
 0x18b   : > { %v567_v30 = vpop.eup %566 }
 0x18c   : > { %v446_v31 = vmul.f32 %v567_v30, %v414_v11 }
 0x18d   : > { %v569_v32 = vpop.eup %568 }
 0x18e   : > { %450 = vst [vmem:[%s170_s8] sm:$0xff] %v446_v31  ;;  %v447_v33 = vmul.f32 %v569_v32, %v416_v15 }
 0x18f   : > { %v571_v34 = vpop.eup %570 }
 0x190   : > { %451 = vst [vmem:[%s170_s8 + $0x8] sm:$0xff] %v447_v33  ;;  %v448_v35 = vmul.f32 %v571_v34, %v418_v18 }
 0x191   : > { %v573_v36 = vpop.eup %572 }
 0x192   : > { %452 = vst [vmem:[%s170_s8 + $0x10] sm:$0xff] %v448_v35  ;;  %v449_v37 = vmul.f32 %v573_v36, %v420_v20 }
 0x194   : > { %453 = vst [vmem:[%s170_s8 + $0x18] sm:$0xff] %v449_v37 }
 0x195 PF: > { %s13_s12 = sadd.s32 1, %s580_s12  }
 0x196   : > { %p10_p4 = scmp.ge.s32.totalorder %s13_s12, 4  }
 0x198   :  { %12 = sbr.rel (!%p10_p4) target bundleno = 1 (0x1), region = 62 }

// kernel: paradis_forward.12
= control target key start
LH: loop header
LB: loop body
LE: loop exit
PB: predicated region body
PF: predicated region fallthrough
CT: control target
= control target key end

     0   :  { %s641_s15 = smov 0   ;;  %s704_s0 = inlined_call_operand.vmem [shape: bf16[2,8,294], index: 0, kind: input, shape index: {}]   ;;  %s705_s1 = inlined_call_operand.vmem [shape: bf16[8,72], index: 1, kind: input, shape index: {}]   ;;  %s706_s2 = inlined_call_operand.vmem [shape: f32[8,1], index: 2, kind: input, shape index: {}]   ;;  %s707_s3 = inlined_call_operand.vmem [shape: f32[2,8,256], index: 3, kind: input, shape index: {}]   ;;  %s708_s4 = inlined_call_operand.vmem [shape: f32[2,8,256], index: 4, kind: output, shape index: {}]  }
   0x1 LB: > { %s544_s16 = sadd.s32 4294967295, %s605_s15   ;;  %p548_p0 = scmp.ge.s32.totalorder %s605_s15, 1  ;;  %s605_s15 = sphi %s641_s15, %s14_s15  }
   0x2   : > { %p172_p1 = scmp.lt.s32.totalorder %s605_s15, 3 }
   0x4   : > { %p173_p2 = pnand %p548_p0, %p172_p1 }
   0x5   : > { %p203_p3 = scmp.lt.s32.totalorder (!%p173_p2), %s544_s16, 1  ;;  %s607_s21 = smov (!%p173_p2), 90  }
   0x6   : > { %176 = sbr.rel (%p173_p2) target bundleno = 405 (0x195), region = 36  ;;  %s608_s22 = smov (!%p173_p2), 92  }
   0x7   : > { %s609_s23 = smov (!%p173_p2), 91   ;;  %s610_s24 = smov (!%p173_p2), 109  }
   0x8   : > { %s611_s25 = smov (!%p173_p2), 108   ;;  %s612_s26 = smov (!%p173_p2), 126  }
   0x9   : > { %s614_s27 = smov (!%p173_p2), 110   ;;  %s615_s28 = smov (!%p173_p2), 127  }
   0xb   : > { %s710_s16 = smov (!%p203_p3, %s544_s16), 1  ;;  %v613_v8 = vmov 0   ;;  %v352_v10 = vld [vmem:[%s706_s2] sm:$0xff]  ;;  %vm231_vm0 = vcmask 1043456   ;;  %vm338_vm1 = vcmask 736256   ;;  %vm308_vm2 = vcmask 752640  }
   0xc   : > { %s572_s17 = smul.u32 12, %s710_s16  ;;  %446 = vmatprep.mubr.bf16.mxu0 %v613_v8  ;;  %590 = vset.pattern.permute.xlu0 %v613_v8  ;;  %vm323_vm3 = vcmask 744448   ;;  %vm278_vm4 = vcmask 891904   ;;  %vm293_vm5 = vcmask 883712   ;;  %vm248_vm6 = vcmask 1031168   ;;  %s570_s7 = sshll.u32 %s710_s16, 4 }
   0xd   : > { %vm263_vm7 = vcmask 900096   ;;  %vm233_vm8 = vcmask 1039360   ;;  %vm403_vm9 = vcmask 588800   ;;  %s212_s10 = scalar_lea.vmem %s707_s3, %s570_s7  ;;  %s217_s13 = scalar_lea.vmem %s708_s4, %s570_s7 }
   0xe   : > { %s655_s20 = scalar_lea.vmem %s704_s0, %s572_s17 }
   0xf   : > { %v658_v0 = vld [vmem:[%s655_s20] sm:$0xff]  ;;  %v328_v1 = vld [vmem:[%s655_s20 + $0x8] sm:$0xf] }
  0x10   : > { %331 = vrot.lane.b32.xlu0 %v658_v0, %s607_s21  ;;  %301 = vrot.lane.b32.xlu1 %v658_v0, %s608_s22  ;;  %v298_v2 = vld [vmem:[%s655_s20 + $0x8] sm:$0xf] }
  0x11   : > { %v313_v3 = vld [vmem:[%s655_s20 + $0x8] sm:$0xf] }
  0x12   : > { %v268_v4 = vld [vmem:[%s655_s20 + $0x8] sm:$0xf] }
  0x13   : > { %v283_v5 = vld [vmem:[%s655_s20 + $0x8] sm:$0xf] }
  0x14   : > { %333 = vrot.lane.b32.xlu0 %v328_v1, %s607_s21  ;;  %303 = vrot.lane.b32.xlu1 %v298_v2, %s608_s22  ;;  %v238_v6 = vld [vmem:[%s655_s20 + $0x8] sm:$0xf] }
  0x15   : > { %v253_v7 = vld [vmem:[%s655_s20 + $0x8] sm:$0xf] }
  0x16   : > { %v222_v9 = vld [vmem:[%s655_s20 + $0x8] sm:$0xf] }
  0x18   : > { %316 = vrot.lane.b32.xlu0 %v658_v0, %s609_s23  ;;  %318 = vrot.lane.b32.xlu1 %v313_v3, %s609_s23 }
  0x1c   : > { %273 = vrot.lane.b32.xlu1 %v268_v4, %s610_s24  ;;  %271 = vrot.lane.b32.xlu0 %v658_v0, %s610_s24 }
  0x20   : > { %288 = vrot.lane.b32.xlu1 %v283_v5, %s611_s25  ;;  %286 = vrot.lane.b32.xlu0 %v658_v0, %s611_s25 }
  0x24   : > { %243 = vrot.lane.b32.xlu1 %v238_v6, %s612_s26  ;;  %241 = vrot.lane.b32.xlu0 %v658_v0, %s612_s26 }
  0x28   : > { %258 = vrot.lane.b32.xlu1 %v253_v7, %s614_s27  ;;  %256 = vrot.lane.b32.xlu0 %v658_v0, %s614_s27  ;;  %v342_v7 = vld [vmem:[%s705_s1] sm:$0xf] }
  0x2c   : > { %227 = vrot.lane.b32.xlu1 %v222_v9, %s615_s28  ;;  %225 = vrot.lane.b32.xlu0 %v658_v0, %s615_s28 }
  0x30   : > { %355 = vperm.xlu0 %590, %v352_v10  }
  0x82   : > { %v332_v11 = vpop.permute.xlu0 %331  ;;  %v302_v12 = vpop.permute.xlu1 %301 }
  0x83   : > { %v335_v15 = vrot.slane %v332_v11, 4  ;;  %v305_v18 = vrot.slane %v302_v12, 4 }
  0x86   : > { %v334_v13 = vpop.permute.xlu0 %333  ;;  %v304_v14 = vpop.permute.xlu1 %303 }
  0x87   : > { %v336_v16 = vrot.slane %v334_v13, 4  ;;  %v306_v17 = vrot.slane %v304_v14, 4 }
  0x89   : > { %v337_v19 = vsel %vm231_vm0, %v335_v15, %v336_v16  ;;  %v307_v20 = vsel %vm231_vm0, %v305_v18, %v306_v17 }
  0x8a   : > { %v317_v21 = vpop.permute.xlu0 %316  ;;  %v319_v22 = vpop.permute.xlu1 %318  ;;  %v339_v23 = vsel %vm338_vm1, %v332_v11, %v337_v19  ;;  %v309_v32 = vsel %vm308_vm2, %v302_v12, %v307_v20 }
  0x8b   : > { %v320_v24 = vrot.slane %v317_v21, 4  ;;  %v321_v25 = vrot.slane %v319_v22, 4  ;;  %v563_v26 = vcombine.high %v339_v23, %v339_v23  ;;  %v562_v27 = vcombine.low %v339_v23, %v339_v23  ;;  %v469_v23 = vld [vmem:[%s212_s10] sm:$0xff] }
  0x8d   : > { %v322_v28 = vsel %vm231_vm0, %v320_v24, %v321_v25  ;;  %564 = vmatprep.subr.msk.bf16.mxu0 %vm231_vm0, %v563_v26  ;;  %v409_v29 = vsel %vm231_vm0, %v562_v27, 0  ;;  %v470_v26 = vld [vmem:[%s212_s10 + $0x8] sm:$0xff] }
  0x8e   : > { %421 = vmatpush1.bf16.msra.mxu0 %v409_v29  ;;  %v274_v30 = vpop.permute.xlu1 %273  ;;  %v272_v31 = vpop.permute.xlu0 %271  ;;  %v324_v33 = vsel %vm323_vm3, %v317_v21, %v322_v28 }
  0x8f   : > { %v276_v34 = vrot.slane %v274_v30, 4  ;;  %v275_v35 = vrot.slane %v272_v31, 4  ;;  %v561_v36 = vcombine.high %v309_v32, %v324_v33  ;;  %v560_v37 = vcombine.low %v309_v32, %v324_v33 }
  0x91   : > { %422 = vmatprep.subr.bf16.mxu0 %v561_v36  ;;  %v277_v40 = vsel %vm231_vm0, %v275_v35, %v276_v34 }
  0x92   : > { %423 = vmatpush1.bf16.msra.mxu0 %v560_v37  ;;  %v289_v38 = vpop.permute.xlu1 %288  ;;  %v287_v39 = vpop.permute.xlu0 %286  ;;  %v279_v44 = vsel %vm278_vm4, %v272_v31, %v277_v40 }
  0x93   : > { %v291_v41 = vrot.slane %v289_v38, 4  ;;  %v290_v42 = vrot.slane %v287_v39, 4 }
  0x95   : > { %v292_v43 = vsel %vm231_vm0, %v290_v42, %v291_v41 }
  0x96   : > { %v294_v45 = vsel %vm293_vm5, %v287_v39, %v292_v43  ;;  %v244_v46 = vpop.permute.xlu1 %243  ;;  %v242_v47 = vpop.permute.xlu0 %241 }
  0x97   : > { %v558_v48 = vcombine.low %v279_v44, %v294_v45  ;;  %v559_v49 = vcombine.high %v279_v44, %v294_v45  ;;  %v246_v50 = vrot.slane %v244_v46, 4  ;;  %v245_v51 = vrot.slane %v242_v47, 4 }
  0x99   : > { %424 = vmatprep.subr.bf16.mxu0 %v559_v49  ;;  %v247_v54 = vsel %vm231_vm0, %v245_v51, %v246_v50 }
  0x9a   : > { %425 = vmatpush1.bf16.msra.mxu0 %v558_v48  ;;  %v259_v52 = vpop.permute.xlu1 %258  ;;  %v257_v53 = vpop.permute.xlu0 %256  ;;  %v249_v58 = vsel %vm248_vm6, %v242_v47, %v247_v54 }
  0x9b   : > { %v261_v55 = vrot.slane %v259_v52, 4  ;;  %v260_v56 = vrot.slane %v257_v53, 4 }
  0x9d   : > { %v262_v57 = vsel %vm231_vm0, %v260_v56, %v261_v55 }
  0x9e   : > { %v264_v59 = vsel %vm263_vm7, %v257_v53, %v262_v57  ;;  %v228_v60 = vpop.permute.xlu1 %227  ;;  %v226_v61 = vpop.permute.xlu0 %225 }
  0x9f   : > { %v556_v62 = vcombine.low %v249_v58, %v264_v59  ;;  %v557_v63 = vcombine.high %v249_v58, %v264_v59  ;;  %v230_v1 = vrot.slane %v228_v60, 4  ;;  %v229_v2 = vrot.slane %v226_v61, 4 }
  0xa1   : > { %v232_v3 = vsel %vm231_vm0, %v229_v2, %v230_v1  ;;  %426 = vmatprep.subr.bf16.mxu0 %v557_v63 }
  0xa2   : > { %v234_v4 = vsel %vm233_vm8, %v226_v61, %v232_v3  ;;  %427 = vmatpush1.bf16.msra.mxu0 %v556_v62 }
  0xa3   : > { %v554_v5 = vcombine.low %v658_v0, %v234_v4  ;;  %v555_v6 = vcombine.high %v658_v0, %v234_v4 }
  0xa5   : > { %428 = vmatprep.subr.bf16.mxu0 %v555_v6 }
  0xa6   : > { %429 = vmatpush1.bf16.msra.mxu0 %v554_v5 }
  0xa9   : > { %565 = vmatmul.mubr.msk.bf16.vlgmr.msra.gmra.mxu0 %vm403_vm9, %v342_v7 }
  0xab   : > { %v356_v8 = vpop.permute.xlu0 %355 }
 0x169   : > { %v448_v9 = vpop.f32.mrf.mxu0 }
 0x16a   : > { %v449_v10 = vadd.f32 %v448_v9, %v356_v8 }
 0x16b   : > { %v450_v11 = vpop.f32.mrf.mxu0 }
 0x16c   : > { %v566_v12 = vmul.f32 -1.442695, %v449_v10  ;;  %v451_v13 = vadd.f32 %v450_v11, %v356_v8 }
 0x16d   : > { %v452_v14 = vpop.f32.mrf.mxu0 }
 0x16e   : > { %591 = vpow2.f32 %v566_v12  ;;  %v567_v15 = vmul.f32 -1.442695, %v451_v13 }
 0x16f   : > { %v453_v16 = vpop.f32.mrf.mxu0 }
 0x170   : > { %593 = vpow2.f32 %v567_v15 }
 0x17b   : > { %v592_v0 = vpop.eup %591 }
 0x17c   : > { %v461_v17 = vadd.f32 1.0, %v592_v0 }
 0x17d   : > { %v594_v18 = vpop.eup %593 }
 0x17e   : > { %595 = vrcp.f32 %v461_v17  ;;  %v462_v19 = vadd.f32 1.0, %v594_v18 }
 0x180   : > { %597 = vrcp.f32 %v462_v19 }
 0x18b   : > { %v596_v20 = vpop.eup %595 }
 0x18c   : > { %v467_v21 = vmul.f32 %v596_v20, %v449_v10 }
 0x18d   : > { %v598_v22 = vpop.eup %597 }
 0x18e   : > { %v471_v24 = vmul.f32 0.0049368357, %v467_v21  ;;  %v468_v25 = vmul.f32 %v598_v22, %v451_v13 }
 0x190   : > { %v473_v27 = vadd.f32 %v471_v24, %v469_v23  ;;  %v472_v28 = vmul.f32 0.0049368357, %v468_v25 }
 0x192   : > { %475 = vst [vmem:[%s217_s13] sm:$0xff] %v473_v27  ;;  %v474_v29 = vadd.f32 %v472_v28, %v470_v26 }
 0x194   : > { %476 = vst [vmem:[%s217_s13 + $0x8] sm:$0xff] %v474_v29 }
 0x195 PF: > { %s14_s15 = sadd.s32 1, %s605_s15  }
 0x196   : > { %p11_p4 = scmp.ge.s32.totalorder %s14_s15, 4  }
 0x198   :  { %13 = sbr.rel (!%p11_p4) target bundleno = 1 (0x1), region = 69 }

// kernel: paradis_forward.13
= control target key start
LH: loop header
LB: loop body
LE: loop exit
PB: predicated region body
PF: predicated region fallthrough
CT: control target
= control target key end

     0   :  { %s544_s12 = smov 0   ;;  %s604_s0 = inlined_call_operand.vmem [shape: bf16[2,8,294], index: 0, kind: input, shape index: {}]   ;;  %s605_s1 = inlined_call_operand.vmem [shape: bf16[8,72], index: 1, kind: input, shape index: {}]   ;;  %s606_s2 = inlined_call_operand.vmem [shape: f32[8,1], index: 2, kind: input, shape index: {}]   ;;  %s607_s3 = inlined_call_operand.vmem [shape: f32[2,8,256], index: 3, kind: output, shape index: {}]  }
   0x1 LB: > { %s465_s13 = sadd.s32 4294967295, %s513_s12   ;;  %p469_p0 = scmp.ge.s32.totalorder %s513_s12, 1  ;;  %s513_s12 = sphi %s544_s12, %s13_s12  }
   0x2   : > { %p137_p1 = scmp.lt.s32.totalorder %s513_s12, 3 }
   0x4   : > { %p138_p2 = pnand %p469_p0, %p137_p1 }
   0x5   : > { %p161_p3 = scmp.lt.s32.totalorder (!%p138_p2), %s465_s13, 1  ;;  %s515_s18 = smov (!%p138_p2), 90  }
   0x6   : > { %141 = sbr.rel (%p138_p2) target bundleno = 368 (0x170), region = 32  ;;  %s516_s19 = smov (!%p138_p2), 92  }
   0x7   : > { %s517_s20 = smov (!%p138_p2), 91   ;;  %s518_s21 = smov (!%p138_p2), 109  }
   0x8   : > { %s519_s22 = smov (!%p138_p2), 108   ;;  %s520_s23 = smov (!%p138_p2), 126  }
   0x9   : > { %s522_s24 = smov (!%p138_p2), 110   ;;  %s523_s25 = smov (!%p138_p2), 127  }
   0xb   : > { %s609_s13 = smov (!%p161_p3, %s465_s13), 1  ;;  %v521_v8 = vmov 0   ;;  %v305_v10 = vld [vmem:[%s606_s2] sm:$0xff]  ;;  %vm184_vm0 = vcmask 1043456   ;;  %vm291_vm1 = vcmask 736256   ;;  %vm261_vm2 = vcmask 752640  }
   0xc   : > { %s488_s14 = smul.u32 12, %s609_s13  ;;  %399 = vmatprep.mubr.bf16.mxu0 %v521_v8  ;;  %506 = vset.pattern.permute.xlu0 %v521_v8  ;;  %vm276_vm3 = vcmask 744448   ;;  %vm231_vm4 = vcmask 891904   ;;  %vm246_vm5 = vcmask 883712   ;;  %vm201_vm6 = vcmask 1031168   ;;  %s487_s30 = sshll.u32 %s609_s13, 4 }
   0xd   : > { %vm216_vm7 = vcmask 900096   ;;  %vm186_vm8 = vcmask 1039360   ;;  %vm356_vm9 = vcmask 588800   ;;  %s170_s6 = scalar_lea.vmem %s607_s3, %s487_s30 }
   0xe   : > { %s558_s17 = scalar_lea.vmem %s604_s0, %s488_s14 }
   0xf   : > { %v561_v0 = vld [vmem:[%s558_s17] sm:$0xff]  ;;  %v281_v1 = vld [vmem:[%s558_s17 + $0x8] sm:$0xf] }
  0x10   : > { %284 = vrot.lane.b32.xlu0 %v561_v0, %s515_s18  ;;  %254 = vrot.lane.b32.xlu1 %v561_v0, %s516_s19  ;;  %v251_v2 = vld [vmem:[%s558_s17 + $0x8] sm:$0xf] }
  0x11   : > { %v266_v3 = vld [vmem:[%s558_s17 + $0x8] sm:$0xf] }
  0x12   : > { %v221_v4 = vld [vmem:[%s558_s17 + $0x8] sm:$0xf] }
  0x13   : > { %v236_v5 = vld [vmem:[%s558_s17 + $0x8] sm:$0xf] }
  0x14   : > { %286 = vrot.lane.b32.xlu0 %v281_v1, %s515_s18  ;;  %256 = vrot.lane.b32.xlu1 %v251_v2, %s516_s19  ;;  %v191_v6 = vld [vmem:[%s558_s17 + $0x8] sm:$0xf] }
  0x15   : > { %v206_v7 = vld [vmem:[%s558_s17 + $0x8] sm:$0xf] }
  0x16   : > { %v175_v9 = vld [vmem:[%s558_s17 + $0x8] sm:$0xf] }
  0x18   : > { %269 = vrot.lane.b32.xlu0 %v561_v0, %s517_s20  ;;  %271 = vrot.lane.b32.xlu1 %v266_v3, %s517_s20 }
  0x1c   : > { %226 = vrot.lane.b32.xlu1 %v221_v4, %s518_s21  ;;  %224 = vrot.lane.b32.xlu0 %v561_v0, %s518_s21 }
  0x20   : > { %241 = vrot.lane.b32.xlu1 %v236_v5, %s519_s22  ;;  %239 = vrot.lane.b32.xlu0 %v561_v0, %s519_s22 }
  0x24   : > { %196 = vrot.lane.b32.xlu1 %v191_v6, %s520_s23  ;;  %194 = vrot.lane.b32.xlu0 %v561_v0, %s520_s23 }
  0x28   : > { %211 = vrot.lane.b32.xlu1 %v206_v7, %s522_s24  ;;  %209 = vrot.lane.b32.xlu0 %v561_v0, %s522_s24  ;;  %v295_v7 = vld [vmem:[%s605_s1] sm:$0xf] }
  0x2c   : > { %180 = vrot.lane.b32.xlu1 %v175_v9, %s523_s25  ;;  %178 = vrot.lane.b32.xlu0 %v561_v0, %s523_s25 }
  0x30   : > { %308 = vperm.xlu0 %506, %v305_v10  }
  0x82   : > { %v285_v11 = vpop.permute.xlu0 %284  ;;  %v255_v12 = vpop.permute.xlu1 %254 }
  0x83   : > { %v288_v15 = vrot.slane %v285_v11, 4  ;;  %v258_v18 = vrot.slane %v255_v12, 4 }
  0x86   : > { %v287_v13 = vpop.permute.xlu0 %286  ;;  %v257_v14 = vpop.permute.xlu1 %256 }
  0x87   : > { %v289_v16 = vrot.slane %v287_v13, 4  ;;  %v259_v17 = vrot.slane %v257_v14, 4 }
  0x89   : > { %v290_v19 = vsel %vm184_vm0, %v288_v15, %v289_v16  ;;  %v260_v20 = vsel %vm184_vm0, %v258_v18, %v259_v17 }
  0x8a   : > { %v270_v21 = vpop.permute.xlu0 %269  ;;  %v272_v22 = vpop.permute.xlu1 %271  ;;  %v292_v23 = vsel %vm291_vm1, %v285_v11, %v290_v19  ;;  %v262_v32 = vsel %vm261_vm2, %v255_v12, %v260_v20 }
  0x8b   : > { %v273_v24 = vrot.slane %v270_v21, 4  ;;  %v274_v25 = vrot.slane %v272_v22, 4  ;;  %v482_v26 = vcombine.high %v292_v23, %v292_v23  ;;  %v481_v27 = vcombine.low %v292_v23, %v292_v23 }
  0x8d   : > { %v275_v28 = vsel %vm184_vm0, %v273_v24, %v274_v25  ;;  %483 = vmatprep.subr.msk.bf16.mxu0 %vm184_vm0, %v482_v26  ;;  %v362_v29 = vsel %vm184_vm0, %v481_v27, 0 }
  0x8e   : > { %374 = vmatpush1.bf16.msra.mxu0 %v362_v29  ;;  %v227_v30 = vpop.permute.xlu1 %226  ;;  %v225_v31 = vpop.permute.xlu0 %224  ;;  %v277_v33 = vsel %vm276_vm3, %v270_v21, %v275_v28 }
  0x8f   : > { %v229_v34 = vrot.slane %v227_v30, 4  ;;  %v228_v35 = vrot.slane %v225_v31, 4  ;;  %v480_v36 = vcombine.high %v262_v32, %v277_v33  ;;  %v479_v37 = vcombine.low %v262_v32, %v277_v33 }
  0x91   : > { %375 = vmatprep.subr.bf16.mxu0 %v480_v36  ;;  %v230_v40 = vsel %vm184_vm0, %v228_v35, %v229_v34 }
  0x92   : > { %376 = vmatpush1.bf16.msra.mxu0 %v479_v37  ;;  %v242_v38 = vpop.permute.xlu1 %241  ;;  %v240_v39 = vpop.permute.xlu0 %239  ;;  %v232_v44 = vsel %vm231_vm4, %v225_v31, %v230_v40 }
  0x93   : > { %v244_v41 = vrot.slane %v242_v38, 4  ;;  %v243_v42 = vrot.slane %v240_v39, 4 }
  0x95   : > { %v245_v43 = vsel %vm184_vm0, %v243_v42, %v244_v41 }
  0x96   : > { %v247_v45 = vsel %vm246_vm5, %v240_v39, %v245_v43  ;;  %v197_v46 = vpop.permute.xlu1 %196  ;;  %v195_v47 = vpop.permute.xlu0 %194 }
  0x97   : > { %v477_v48 = vcombine.low %v232_v44, %v247_v45  ;;  %v478_v49 = vcombine.high %v232_v44, %v247_v45  ;;  %v199_v50 = vrot.slane %v197_v46, 4  ;;  %v198_v51 = vrot.slane %v195_v47, 4 }
  0x99   : > { %377 = vmatprep.subr.bf16.mxu0 %v478_v49  ;;  %v200_v54 = vsel %vm184_vm0, %v198_v51, %v199_v50 }
  0x9a   : > { %378 = vmatpush1.bf16.msra.mxu0 %v477_v48  ;;  %v212_v52 = vpop.permute.xlu1 %211  ;;  %v210_v53 = vpop.permute.xlu0 %209  ;;  %v202_v58 = vsel %vm201_vm6, %v195_v47, %v200_v54 }
  0x9b   : > { %v214_v55 = vrot.slane %v212_v52, 4  ;;  %v213_v56 = vrot.slane %v210_v53, 4 }
  0x9d   : > { %v215_v57 = vsel %vm184_vm0, %v213_v56, %v214_v55 }
  0x9e   : > { %v217_v59 = vsel %vm216_vm7, %v210_v53, %v215_v57  ;;  %v181_v60 = vpop.permute.xlu1 %180  ;;  %v179_v61 = vpop.permute.xlu0 %178 }
  0x9f   : > { %v475_v62 = vcombine.low %v202_v58, %v217_v59  ;;  %v476_v63 = vcombine.high %v202_v58, %v217_v59  ;;  %v183_v1 = vrot.slane %v181_v60, 4  ;;  %v182_v2 = vrot.slane %v179_v61, 4 }
  0xa1   : > { %v185_v3 = vsel %vm184_vm0, %v182_v2, %v183_v1  ;;  %379 = vmatprep.subr.bf16.mxu0 %v476_v63 }
  0xa2   : > { %v187_v4 = vsel %vm186_vm8, %v179_v61, %v185_v3  ;;  %380 = vmatpush1.bf16.msra.mxu0 %v475_v62 }
  0xa3   : > { %v473_v5 = vcombine.low %v561_v0, %v187_v4  ;;  %v474_v6 = vcombine.high %v561_v0, %v187_v4 }
  0xa5   : > { %381 = vmatprep.subr.bf16.mxu0 %v474_v6 }
  0xa6   : > { %382 = vmatpush1.bf16.msra.mxu0 %v473_v5 }
  0xa9   : > { %484 = vmatmul.mubr.msk.bf16.vlgmr.msra.gmra.mxu0 %vm356_vm9, %v295_v7 }
  0xab   : > { %v309_v8 = vpop.permute.xlu0 %308 }
 0x169   : > { %v401_v9 = vpop.f32.mrf.mxu0 }
 0x16a   : > { %v402_v10 = vadd.f32 %v401_v9, %v309_v8 }
 0x16b   : > { %v403_v11 = vpop.f32.mrf.mxu0 }
 0x16c   : > { %408 = vst [vmem:[%s170_s6] sm:$0xff] %v402_v10  ;;  %v404_v12 = vadd.f32 %v403_v11, %v309_v8 }
 0x16d   : > { %v405_v0 = vpop.f32.mrf.mxu0 }
 0x16e   : > { %409 = vst [vmem:[%s170_s6 + $0x8] sm:$0xff] %v404_v12 }
 0x16f   : > { %v406_v13 = vpop.f32.mrf.mxu0 }
 0x170 PF: > { %s13_s12 = sadd.s32 1, %s513_s12  }
 0x171   : > { %p10_p4 = scmp.ge.s32.totalorder %s13_s12, 4  }
 0x173   :  { %12 = sbr.rel (!%p10_p4) target bundleno = 1 (0x1), region = 62 }

</bundles_post_ra>
